<compile_context>
chip_gen: v6e
topology: v6e:2x2x1
jax: 0.10.0
libtpu: 0.0.40
codegen_flags: <defaults>
</compile_context>

<pallas_src>
import math
from functools import partial

import jax
import jax.numpy as jnp
import numpy as np
from jax.experimental import pallas as pl
from jax.experimental.pallas import tpu as pltpu

_INV_SQRT2 = 0.7071067811865475


def _gelu_exact(x):
    # F.gelu default (erf-based, "exact"); multiply instead of divide.
    return 0.5 * x * (1.0 + jax.lax.erf(x * _INV_SQRT2))


def _vmem_limit_bytes(S, D, d_ff, n_heads, d_k, block_q, block_k,
                      compute_dtype, io_dtype):
    """Estimate the kernel's VMEM footprint and budget it with headroom."""
    cd_b = jnp.dtype(compute_dtype).itemsize
    io_b = jnp.dtype(io_dtype).itemsize
    lane_pad = -(-d_k // 128) * 128                     # scratch slab lane padding
    scratch = 3 * n_heads * S * lane_pad * cd_b         # persistent QKV scratch
    weights = (3 * D * D + D * D + 2 * D * d_ff) * cd_b + (8 * D + d_ff) * 4
    x_blk = 2 * S * D * io_b                            # double-buffered x block
    o_blk = 2 * block_q * D * io_b
    tile = (2 * block_q * d_ff                          # FFN hidden (f32)
            + 2 * n_heads * block_q * block_k           # scores / probs
            + 2 * n_heads * block_q * (d_k + 2)         # flash carries
            + 6 * block_q * D) * 4                      # misc (TQ, D) temporaries
    proj = S * 3 * D * 4                                # one-off (S, 3D) f32 value
    required = scratch + weights + x_blk + o_blk + max(tile, proj)
    try:
        cap = max(int(pltpu.get_tpu_info().vmem_capacity_bytes), 64 * 1024 * 1024)
    except Exception:
        cap = 128 * 1024 * 1024
    want = max(2 * required + 8 * 1024 * 1024, 32 * 1024 * 1024)
    return min(want, cap - 8 * 1024 * 1024)


def transformer_block_kernel(x_ref, wqkv_ref, wo_ref, bo_ref,
                             w1_ref, b1_ref, w2_ref, b2_ref,
                             g1_ref, be1_ref, g2_ref, be2_ref,
                             o_ref, qkv_sc,
                             *, n_heads, d_k, eps, block_q, block_k,
                             compute_dtype):
    qi = pl.program_id(1)
    seq = x_ref.shape[1]
    cd = compute_dtype
    n_k = seq // block_k

    # ---- fused QKV projection, ONCE per batch element (qi == 0) ------------
    # Single (S, D) @ (D, 3D) matmul (full MXU fill, one LHS pass). The result
    # is split once into per-(Q|K|V, head) slabs of the persistent scratch so
    # every per-tile read below is a zero-cost leading-axis / sublane view.
    # 1/sqrt(d_k) is already folded into the Q columns of wqkv (host side).
    @pl.when(qi == 0)
    def _():
        xs = x_ref[0].astype(cd)                                       # (S, D)
        qkv = jnp.dot(xs, wqkv_ref[...],
                      preferred_element_type=jnp.float32)              # (S, 3D)
        for c in range(3):                   # static: Q / K / V
            for h in range(n_heads):         # static: heads
                col = (c * n_heads + h) * d_k
                qkv_sc[c, h] = qkv[:, col:col + d_k].astype(cd)

    row0 = pl.multiple_of(qi * block_q, block_q)
    x_tile = x_ref[0, pl.ds(row0, block_q), :].astype(jnp.float32)     # (TQ, D)

    # ---- multi-head attention: flash-style streaming over K/V tiles --------
    q = qkv_sc[0, :, pl.ds(row0, block_q), :]                          # (H,TQ,dk)

    def kv_step(kb, carry):
        m_prev, l_prev, acc_prev = carry
        col0 = pl.multiple_of(kb * block_k, block_k)
        k_t = qkv_sc[1, :, pl.ds(col0, block_k), :]                    # (H,BK,dk)
        v_t = qkv_sc[2, :, pl.ds(col0, block_k), :]                    # (H,BK,dk)
        s = jnp.einsum("hqd,hkd->hqk", q, k_t,
                       preferred_element_type=jnp.float32)             # (H,TQ,BK)
        m_new = jnp.maximum(m_prev, jnp.max(s, axis=-1, keepdims=True))
        alpha = jnp.exp(m_prev - m_new)
        p = jnp.exp(s - m_new)
        l_new = alpha * l_prev + jnp.sum(p, axis=-1, keepdims=True)
        acc_new = alpha * acc_prev + jnp.einsum(
            "hqk,hkd->hqd", p.astype(cd), v_t,
            preferred_element_type=jnp.float32)
        return m_new, l_new, acc_new

    m0 = jnp.full((n_heads, block_q, 1), -jnp.inf, jnp.float32)
    l0 = jnp.zeros((n_heads, block_q, 1), jnp.float32)
    a0 = jnp.zeros((n_heads, block_q, d_k), jnp.float32)
    _, l_fin, acc = jax.lax.fori_loop(0, n_k, kv_step, (m0, l0, a0))

    ctx = acc * pl.reciprocal(l_fin, approx=True)                      # (H,TQ,dk)

    # ---- output projection: fuse heads into one (TQ, D) @ (D, D) matmul ----
    ctx_cd = ctx.astype(cd)
    ctx_flat = jnp.concatenate([ctx_cd[h] for h in range(n_heads)], axis=-1)
    attn = jnp.dot(ctx_flat, wo_ref[...],
                   preferred_element_type=jnp.float32) + bo_ref[0]

    # ---- residual + LayerNorm1 (biased variance, f32 statistics) -----------
    y = x_tile + attn
    mu = jnp.mean(y, axis=-1, keepdims=True)
    var = jnp.mean(jnp.square(y - mu), axis=-1, keepdims=True)
    y = (y - mu) * jax.lax.rsqrt(var + eps) * g1_ref[0] + be1_ref[0]

    # ---- position-wise feed-forward (exact-erf GELU) -----------------------
    h1 = jnp.dot(y.astype(cd), w1_ref[...],
                 preferred_element_type=jnp.float32) + b1_ref[0]
    h1 = _gelu_exact(h1)
    ff = jnp.dot(h1.astype(cd), w2_ref[...],
                 preferred_element_type=jnp.float32) + b2_ref[0]

    # ---- residual + LayerNorm2 ----------------------------------------------
    z = y + ff
    mu2 = jnp.mean(z, axis=-1, keepdims=True)
    var2 = jnp.mean(jnp.square(z - mu2), axis=-1, keepdims=True)
    z = (z - mu2) * jax.lax.rsqrt(var2 + eps) * g2_ref[0] + be2_ref[0]

    o_ref[0] = z.astype(o_ref.dtype)


def transformer_block(x, params, *, n_heads, eps=1e-5, block_q=None,
                      block_k=None, compute_dtype=jnp.float32):
    B, S, D = x.shape
    assert D % n_heads == 0
    d_k = D // n_heads
    d_ff = params["w1"].shape[1]

    if block_q is None:
        block_q = S if S <= 128 else 128
    if block_k is None:
        block_k = S if S <= 512 else 512
    assert S % block_q == 0 and (block_q == S or block_q % 8 == 0)
    assert S % block_k == 0 and (block_k == S or block_k % 8 == 0)
    n_q = S // block_q

    # Host-side weight prep:
    #  * fused (D, 3D) QKV weight, column order [Q_h0..Q_hH-1 | K... | V...]
    #  * 1/sqrt(d_k) attention scale folded into the Q columns
    #  * w_o stays a plain (D, D) matrix (rows are already head-major), so the
    #    output projection is a single (TQ, D) @ (D, D) matmul in the kernel.
    wqkv = jnp.concatenate(
        [params["wq"] * (1.0 / math.sqrt(d_k)), params["wk"], params["wv"]],
        axis=1)                                                       # (D, 3D)
    wo, w1, w2 = params["wo"], params["w1"], params["w2"]
    if compute_dtype != jnp.float32:
        # bf16 matmul operands/weights: halves DMA + VMEM; accumulation stays f32.
        wqkv = wqkv.astype(compute_dtype)
        wo = wo.astype(compute_dtype)
        w1 = w1.astype(compute_dtype)
        w2 = w2.astype(compute_dtype)

    kernel = partial(transformer_block_kernel, n_heads=n_heads, d_k=d_k,
                     eps=eps, block_q=block_q, block_k=block_k,
                     compute_dtype=compute_dtype)

    args = (x, wqkv, wo, params["bo"], w1, params["b1"], w2, params["b2"],
            params["g1"], params["be1"], params["g2"], params["be2"])

    vmem_limit = _vmem_limit_bytes(S, D, d_ff, n_heads, d_k, block_q, block_k,
                                   compute_dtype, x.dtype)

    def build(single_buffer_weights):
        def const_spec(*shape):
            kw = {}
            if single_buffer_weights:
                # Constant index_map over the whole grid -> one buffer is enough;
                # default double-buffering would waste VMEM on wqkv/w1/w2.
                kw["pipeline_mode"] = pl.Buffered(1)
            return pl.BlockSpec(shape, lambda b, q: (0,) * len(shape), **kw)

        return pl.pallas_call(
            kernel,
            out_shape=jax.ShapeDtypeStruct((B, S, D), x.dtype),
            grid=(B, n_q),
            in_specs=[
                pl.BlockSpec((1, S, D), lambda b, q: (b, 0, 0)),  # x (full seq)
                const_spec(D, 3 * D),                              # fused QKV weight
                const_spec(D, D), const_spec(1, D),                # wo, bo
                const_spec(D, d_ff), const_spec(1, d_ff),          # w1, b1
                const_spec(d_ff, D), const_spec(1, D),             # w2, b2
                const_spec(1, D), const_spec(1, D),                # gamma1, beta1
                const_spec(1, D), const_spec(1, D),                # gamma2, beta2
            ],
            out_specs=pl.BlockSpec((1, block_q, D), lambda b, q: (b, q, 0)),
            # NOTE: scratch is carried across the q axis -> q MUST stay the
            # innermost, "arbitrary" grid dimension. Batch is "parallel" so a
            # v7x megacore can shard batch elements across its two TensorCores.
            scratch_shapes=[pltpu.VMEM((3, n_heads, S, d_k), compute_dtype)],
            compiler_params=pltpu.CompilerParams(
                dimension_semantics=("parallel", "arbitrary"),
                vmem_limit_bytes=vmem_limit),
        )(*args)

    try:
        return build(True)
    except Exception:
        # Fallback for Pallas versions without BlockSpec(pipeline_mode=Buffered(1)).
        return build(False)


def reference(x, params, *, n_heads, eps=1e-5):
    """Pure-JAX mirror of the PyTorch forward (eval mode)."""
    B, S, D = x.shape
    d_k = D // n_heads
    q = (x @ params["wq"]).reshape(B, S, n_heads, d_k).transpose(0, 2, 1, 3)
    k = (x @ params["wk"]).reshape(B, S, n_heads, d_k).transpose(0, 2, 1, 3)
    v = (x @ params["wv"]).reshape(B, S, n_heads, d_k).transpose(0, 2, 1, 3)
    s = jnp.einsum("bhqd,bhkd->bhqk", q, k) / math.sqrt(d_k)
    p = jax.nn.softmax(s, axis=-1)
    a = jnp.einsum("bhqk,bhkd->bhqd", p, v).transpose(0, 2, 1, 3).reshape(B, S, D)
    a = a @ params["wo"] + params["bo"][0]

    def ln(t, g, b):
        mu = t.mean(-1, keepdims=True)
        var = ((t - mu) ** 2).mean(-1, keepdims=True)
        return (t - mu) / jnp.sqrt(var + eps) * g[0] + b[0]

    y = ln(x + a, params["g1"], params["be1"])
    h = jax.nn.gelu(y @ params["w1"] + params["b1"][0], approximate=False)
    ff = h @ params["w2"] + params["b2"][0]
    return ln(y + ff, params["g2"], params["be2"])


if __name__ == "__main__":
    B, S, D, H, D_FF = 2, 16, 32, 4, 64
    EPS = 1e-5

    key = jax.random.PRNGKey(0)
    ks = jax.random.split(key, 10)
    init = lambda k, shape, scale=0.05: (scale * jax.random.normal(k, shape)).astype(jnp.float32)

    params = {
        "wq": init(ks[0], (D, D)),
        "wk": init(ks[1], (D, D)),
        "wv": init(ks[2], (D, D)),
        "wo": init(ks[3], (D, D)),
        "bo": init(ks[4], (1, D)),
        "w1": init(ks[5], (D, D_FF)),
        "b1": init(ks[6], (1, D_FF)),
        "w2": init(ks[7], (D_FF, D)),
        "b2": init(ks[8], (1, D)),
        # LayerNorm affine params (PyTorch defaults: gamma=1, beta=0)
        "g1": jnp.ones((1, D), jnp.float32),
        "be1": jnp.zeros((1, D), jnp.float32),
        "g2": jnp.ones((1, D), jnp.float32),
        "be2": jnp.zeros((1, D), jnp.float32),
    }

    x = jax.random.normal(ks[9], (B, S, D), dtype=jnp.float32)

    ref = jax.block_until_ready(reference(x, params, n_heads=H, eps=EPS))

    # f32 compute path; block_q=8 / block_k=8 exercise the persistent QKV
    # scratch reuse AND the flash-style K/V inner loop (2 q-tiles x 2 k-tiles).
    # Tolerance 1e-3 accounts for the approximate (EUP) softmax reciprocal.
    out = jax.block_until_ready(
        transformer_block(x, params, n_heads=H, eps=EPS, block_q=8, block_k=8))
    np.testing.assert_allclose(np.asarray(out), np.asarray(ref), rtol=1e-3, atol=1e-3)

    # bf16 matmul path (bf16 weights + scratch, f32 MXU accumulation and
    # f32 softmax / LayerNorm statistics).
    out_bf16 = jax.block_until_ready(
        transformer_block(x, params, n_heads=H, eps=EPS, block_q=8, block_k=8,
                          compute_dtype=jnp.bfloat16))
    np.testing.assert_allclose(np.asarray(out_bf16), np.asarray(ref),
                               rtol=5e-2, atol=5e-2)

    print("KERNEL_OK")
</pallas_src>

<mosaic_0001>
module attributes {stable_mosaic.version = 11 : i64} {
  func.func @transformer_block_kernel(%arg0: i32, %arg1: i32, %arg2: memref<1x16x32xf32, #tpu.memory_space<vmem>>, %arg3: memref<32x96xf32, #tpu.memory_space<vmem>>, %arg4: memref<32x32xf32, #tpu.memory_space<vmem>>, %arg5: memref<1x32xf32, #tpu.memory_space<vmem>>, %arg6: memref<32x64xf32, #tpu.memory_space<vmem>>, %arg7: memref<1x64xf32, #tpu.memory_space<vmem>>, %arg8: memref<64x32xf32, #tpu.memory_space<vmem>>, %arg9: memref<1x32xf32, #tpu.memory_space<vmem>>, %arg10: memref<1x32xf32, #tpu.memory_space<vmem>>, %arg11: memref<1x32xf32, #tpu.memory_space<vmem>>, %arg12: memref<1x32xf32, #tpu.memory_space<vmem>>, %arg13: memref<1x32xf32, #tpu.memory_space<vmem>>, %arg14: memref<1x8x32xf32, #tpu.memory_space<vmem>>, %arg15: memref<3x4x16x8xf32, #tpu.memory_space<vmem>>) attributes {dimension_semantics = [#tpu.dimension_semantics<parallel>, #tpu.dimension_semantics<arbitrary>], iteration_bounds = array<i64: 2, 2>, scalar_prefetch = 0 : i64, scratch_operands = 1 : i64, tpu.core_type = #tpu.core_type<tc>, window_params = [{transform_indices = @transform_0, window_bounds = array<i64: 1, 16, 32>}, {pipeline_mode = #tpu.pipeline_mode<synchronous>, transform_indices = @transform_1, window_bounds = array<i64: 32, 96>}, {pipeline_mode = #tpu.pipeline_mode<synchronous>, transform_indices = @transform_2, window_bounds = array<i64: 32, 32>}, {pipeline_mode = #tpu.pipeline_mode<synchronous>, transform_indices = @transform_3, window_bounds = array<i64: 1, 32>}, {pipeline_mode = #tpu.pipeline_mode<synchronous>, transform_indices = @transform_4, window_bounds = array<i64: 32, 64>}, {pipeline_mode = #tpu.pipeline_mode<synchronous>, transform_indices = @transform_5, window_bounds = array<i64: 1, 64>}, {pipeline_mode = #tpu.pipeline_mode<synchronous>, transform_indices = @transform_6, window_bounds = array<i64: 64, 32>}, {pipeline_mode = #tpu.pipeline_mode<synchronous>, transform_indices = @transform_7, window_bounds = array<i64: 1, 32>}, {pipeline_mode = #tpu.pipeline_mode<synchronous>, transform_indices = @transform_8, window_bounds = array<i64: 1, 32>}, {pipeline_mode = #tpu.pipeline_mode<synchronous>, transform_indices = @transform_9, window_bounds = array<i64: 1, 32>}, {pipeline_mode = #tpu.pipeline_mode<synchronous>, transform_indices = @transform_10, window_bounds = array<i64: 1, 32>}, {pipeline_mode = #tpu.pipeline_mode<synchronous>, transform_indices = @transform_11, window_bounds = array<i64: 1, 32>}, {transform_indices = @transform_12, window_bounds = array<i64: 1, 8, 32>}]} {
    %c0_i32 = arith.constant 0 : i32
    %0 = arith.cmpi eq, %arg1, %c0_i32 : i32
    %1 = arith.extui %0 : i1 to i32
    %c0_i32_0 = arith.constant 0 : i32
    %2 = arith.cmpi ne, %1, %c0_i32_0 : i32
    scf.if %2 {
      %c0_48 = arith.constant 0 : index
      %c0_49 = arith.constant 0 : index
      %c0_50 = arith.constant 0 : index
      %118 = vector.load %arg2[%c0_48, %c0_49, %c0_50] : memref<1x16x32xf32, #tpu.memory_space<vmem>>, vector<1x16x32xf32>
      %119 = vector.shape_cast %118 : vector<1x16x32xf32> to vector<16x32xf32>
      %c0_51 = arith.constant 0 : index
      %c0_52 = arith.constant 0 : index
      %120 = vector.load %arg3[%c0_51, %c0_52] : memref<32x96xf32, #tpu.memory_space<vmem>>, vector<32x96xf32>
      %cst_53 = arith.constant dense<0.000000e+00> : vector<16x96xf32>
      %121 = tpu.matmul %119, %120, %cst_53 {dimension_numbers = #tpu.dot_dimension_numbers<[1], [0], [0], [1], [0, 0, 1, 1], [], []>} : vector<16x32xf32>, vector<32x96xf32>, vector<16x96xf32> -> vector<16x96xf32>
      %122 = vector.extract_strided_slice %121 {offsets = [0, 0], sizes = [16, 8], strides = [1, 1]} : vector<16x96xf32> to vector<16x8xf32>
      %c0_54 = arith.constant 0 : index
      %c0_55 = arith.constant 0 : index
      %c0_56 = arith.constant 0 : index
      %c0_57 = arith.constant 0 : index
      %123 = vector.load %arg15[%c0_54, %c0_55, %c0_56, %c0_57] : memref<3x4x16x8xf32, #tpu.memory_space<vmem>>, vector<1x1x16x8xf32>
      %124 = vector.shape_cast %123 : vector<1x1x16x8xf32> to vector<16x8xf32>
      %125 = vector.shape_cast %122 : vector<16x8xf32> to vector<1x1x16x8xf32>
      tpu.vector_store %arg15[%c0_54, %c0_55, %c0_56, %c0_57], %125 {strides = array<i32>} : memref<3x4x16x8xf32, #tpu.memory_space<vmem>>, vector<1x1x16x8xf32>,
      %126 = vector.extract_strided_slice %121 {offsets = [0, 8], sizes = [16, 8], strides = [1, 1]} : vector<16x96xf32> to vector<16x8xf32>
      %c0_58 = arith.constant 0 : index
      %c1 = arith.constant 1 : index
      %c0_59 = arith.constant 0 : index
      %c0_60 = arith.constant 0 : index
      %127 = vector.load %arg15[%c0_58, %c1, %c0_59, %c0_60] : memref<3x4x16x8xf32, #tpu.memory_space<vmem>>, vector<1x1x16x8xf32>
      %128 = vector.shape_cast %127 : vector<1x1x16x8xf32> to vector<16x8xf32>
      %129 = vector.shape_cast %126 : vector<16x8xf32> to vector<1x1x16x8xf32>
      tpu.vector_store %arg15[%c0_58, %c1, %c0_59, %c0_60], %129 {strides = array<i32>} : memref<3x4x16x8xf32, #tpu.memory_space<vmem>>, vector<1x1x16x8xf32>,
      %130 = vector.extract_strided_slice %121 {offsets = [0, 16], sizes = [16, 8], strides = [1, 1]} : vector<16x96xf32> to vector<16x8xf32>
      %c0_61 = arith.constant 0 : index
      %c2 = arith.constant 2 : index
      %c0_62 = arith.constant 0 : index
      %c0_63 = arith.constant 0 : index
      %131 = vector.load %arg15[%c0_61, %c2, %c0_62, %c0_63] : memref<3x4x16x8xf32, #tpu.memory_space<vmem>>, vector<1x1x16x8xf32>
      %132 = vector.shape_cast %131 : vector<1x1x16x8xf32> to vector<16x8xf32>
      %133 = vector.shape_cast %130 : vector<16x8xf32> to vector<1x1x16x8xf32>
      tpu.vector_store %arg15[%c0_61, %c2, %c0_62, %c0_63], %133 {strides = array<i32>} : memref<3x4x16x8xf32, #tpu.memory_space<vmem>>, vector<1x1x16x8xf32>,
      %134 = vector.extract_strided_slice %121 {offsets = [0, 24], sizes = [16, 8], strides = [1, 1]} : vector<16x96xf32> to vector<16x8xf32>
      %c0_64 = arith.constant 0 : index
      %c3 = arith.constant 3 : index
      %c0_65 = arith.constant 0 : index
      %c0_66 = arith.constant 0 : index
      %135 = vector.load %arg15[%c0_64, %c3, %c0_65, %c0_66] : memref<3x4x16x8xf32, #tpu.memory_space<vmem>>, vector<1x1x16x8xf32>
      %136 = vector.shape_cast %135 : vector<1x1x16x8xf32> to vector<16x8xf32>
      %137 = vector.shape_cast %134 : vector<16x8xf32> to vector<1x1x16x8xf32>
      tpu.vector_store %arg15[%c0_64, %c3, %c0_65, %c0_66], %137 {strides = array<i32>} : memref<3x4x16x8xf32, #tpu.memory_space<vmem>>, vector<1x1x16x8xf32>,
      %138 = vector.extract_strided_slice %121 {offsets = [0, 32], sizes = [16, 8], strides = [1, 1]} : vector<16x96xf32> to vector<16x8xf32>
      %c1_67 = arith.constant 1 : index
      %c0_68 = arith.constant 0 : index
      %c0_69 = arith.constant 0 : index
      %c0_70 = arith.constant 0 : index
      %139 = vector.load %arg15[%c1_67, %c0_68, %c0_69, %c0_70] : memref<3x4x16x8xf32, #tpu.memory_space<vmem>>, vector<1x1x16x8xf32>
      %140 = vector.shape_cast %139 : vector<1x1x16x8xf32> to vector<16x8xf32>
      %141 = vector.shape_cast %138 : vector<16x8xf32> to vector<1x1x16x8xf32>
      tpu.vector_store %arg15[%c1_67, %c0_68, %c0_69, %c0_70], %141 {strides = array<i32>} : memref<3x4x16x8xf32, #tpu.memory_space<vmem>>, vector<1x1x16x8xf32>,
      %142 = vector.extract_strided_slice %121 {offsets = [0, 40], sizes = [16, 8], strides = [1, 1]} : vector<16x96xf32> to vector<16x8xf32>
      %c1_71 = arith.constant 1 : index
      %c1_72 = arith.constant 1 : index
      %c0_73 = arith.constant 0 : index
      %c0_74 = arith.constant 0 : index
      %143 = vector.load %arg15[%c1_71, %c1_72, %c0_73, %c0_74] : memref<3x4x16x8xf32, #tpu.memory_space<vmem>>, vector<1x1x16x8xf32>
      %144 = vector.shape_cast %143 : vector<1x1x16x8xf32> to vector<16x8xf32>
      %145 = vector.shape_cast %142 : vector<16x8xf32> to vector<1x1x16x8xf32>
      tpu.vector_store %arg15[%c1_71, %c1_72, %c0_73, %c0_74], %145 {strides = array<i32>} : memref<3x4x16x8xf32, #tpu.memory_space<vmem>>, vector<1x1x16x8xf32>,
      %146 = vector.extract_strided_slice %121 {offsets = [0, 48], sizes = [16, 8], strides = [1, 1]} : vector<16x96xf32> to vector<16x8xf32>
      %c1_75 = arith.constant 1 : index
      %c2_76 = arith.constant 2 : index
      %c0_77 = arith.constant 0 : index
      %c0_78 = arith.constant 0 : index
      %147 = vector.load %arg15[%c1_75, %c2_76, %c0_77, %c0_78] : memref<3x4x16x8xf32, #tpu.memory_space<vmem>>, vector<1x1x16x8xf32>
      %148 = vector.shape_cast %147 : vector<1x1x16x8xf32> to vector<16x8xf32>
      %149 = vector.shape_cast %146 : vector<16x8xf32> to vector<1x1x16x8xf32>
      tpu.vector_store %arg15[%c1_75, %c2_76, %c0_77, %c0_78], %149 {strides = array<i32>} : memref<3x4x16x8xf32, #tpu.memory_space<vmem>>, vector<1x1x16x8xf32>,
      %150 = vector.extract_strided_slice %121 {offsets = [0, 56], sizes = [16, 8], strides = [1, 1]} : vector<16x96xf32> to vector<16x8xf32>
      %c1_79 = arith.constant 1 : index
      %c3_80 = arith.constant 3 : index
      %c0_81 = arith.constant 0 : index
      %c0_82 = arith.constant 0 : index
      %151 = vector.load %arg15[%c1_79, %c3_80, %c0_81, %c0_82] : memref<3x4x16x8xf32, #tpu.memory_space<vmem>>, vector<1x1x16x8xf32>
      %152 = vector.shape_cast %151 : vector<1x1x16x8xf32> to vector<16x8xf32>
      %153 = vector.shape_cast %150 : vector<16x8xf32> to vector<1x1x16x8xf32>
      tpu.vector_store %arg15[%c1_79, %c3_80, %c0_81, %c0_82], %153 {strides = array<i32>} : memref<3x4x16x8xf32, #tpu.memory_space<vmem>>, vector<1x1x16x8xf32>,
      %154 = vector.extract_strided_slice %121 {offsets = [0, 64], sizes = [16, 8], strides = [1, 1]} : vector<16x96xf32> to vector<16x8xf32>
      %c2_83 = arith.constant 2 : index
      %c0_84 = arith.constant 0 : index
      %c0_85 = arith.constant 0 : index
      %c0_86 = arith.constant 0 : index
      %155 = vector.load %arg15[%c2_83, %c0_84, %c0_85, %c0_86] : memref<3x4x16x8xf32, #tpu.memory_space<vmem>>, vector<1x1x16x8xf32>
      %156 = vector.shape_cast %155 : vector<1x1x16x8xf32> to vector<16x8xf32>
      %157 = vector.shape_cast %154 : vector<16x8xf32> to vector<1x1x16x8xf32>
      tpu.vector_store %arg15[%c2_83, %c0_84, %c0_85, %c0_86], %157 {strides = array<i32>} : memref<3x4x16x8xf32, #tpu.memory_space<vmem>>, vector<1x1x16x8xf32>,
      %158 = vector.extract_strided_slice %121 {offsets = [0, 72], sizes = [16, 8], strides = [1, 1]} : vector<16x96xf32> to vector<16x8xf32>
      %c2_87 = arith.constant 2 : index
      %c1_88 = arith.constant 1 : index
      %c0_89 = arith.constant 0 : index
      %c0_90 = arith.constant 0 : index
      %159 = vector.load %arg15[%c2_87, %c1_88, %c0_89, %c0_90] : memref<3x4x16x8xf32, #tpu.memory_space<vmem>>, vector<1x1x16x8xf32>
      %160 = vector.shape_cast %159 : vector<1x1x16x8xf32> to vector<16x8xf32>
      %161 = vector.shape_cast %158 : vector<16x8xf32> to vector<1x1x16x8xf32>
      tpu.vector_store %arg15[%c2_87, %c1_88, %c0_89, %c0_90], %161 {strides = array<i32>} : memref<3x4x16x8xf32, #tpu.memory_space<vmem>>, vector<1x1x16x8xf32>,
      %162 = vector.extract_strided_slice %121 {offsets = [0, 80], sizes = [16, 8], strides = [1, 1]} : vector<16x96xf32> to vector<16x8xf32>
      %c2_91 = arith.constant 2 : index
      %c2_92 = arith.constant 2 : index
      %c0_93 = arith.constant 0 : index
      %c0_94 = arith.constant 0 : index
      %163 = vector.load %arg15[%c2_91, %c2_92, %c0_93, %c0_94] : memref<3x4x16x8xf32, #tpu.memory_space<vmem>>, vector<1x1x16x8xf32>
      %164 = vector.shape_cast %163 : vector<1x1x16x8xf32> to vector<16x8xf32>
      %165 = vector.shape_cast %162 : vector<16x8xf32> to vector<1x1x16x8xf32>
      tpu.vector_store %arg15[%c2_91, %c2_92, %c0_93, %c0_94], %165 {strides = array<i32>} : memref<3x4x16x8xf32, #tpu.memory_space<vmem>>, vector<1x1x16x8xf32>,
      %166 = vector.extract_strided_slice %121 {offsets = [0, 88], sizes = [16, 8], strides = [1, 1]} : vector<16x96xf32> to vector<16x8xf32>
      %c2_95 = arith.constant 2 : index
      %c3_96 = arith.constant 3 : index
      %c0_97 = arith.constant 0 : index
      %c0_98 = arith.constant 0 : index
      %167 = vector.load %arg15[%c2_95, %c3_96, %c0_97, %c0_98] : memref<3x4x16x8xf32, #tpu.memory_space<vmem>>, vector<1x1x16x8xf32>
      %168 = vector.shape_cast %167 : vector<1x1x16x8xf32> to vector<16x8xf32>
      %169 = vector.shape_cast %166 : vector<16x8xf32> to vector<1x1x16x8xf32>
      tpu.vector_store %arg15[%c2_95, %c3_96, %c0_97, %c0_98], %169 {strides = array<i32>} : memref<3x4x16x8xf32, #tpu.memory_space<vmem>>, vector<1x1x16x8xf32>,
    } else {
    }
    %c8_i32 = arith.constant 8 : i32
    %3 = arith.muli %arg1, %c8_i32 : i32
    %4 = tpu.assume_multiple %3, 8 : i32
    %c0 = arith.constant 0 : index
    %5 = arith.index_cast %4 : i32 to index
    %c0_1 = arith.constant 0 : index
    %6 = vector.load %arg2[%c0, %5, %c0_1] : memref<1x16x32xf32, #tpu.memory_space<vmem>>, vector<1x8x32xf32>
    %7 = vector.shape_cast %6 : vector<1x8x32xf32> to vector<8x32xf32>
    %c0_2 = arith.constant 0 : index
    %c0_3 = arith.constant 0 : index
    %8 = arith.index_cast %4 : i32 to index
    %c0_4 = arith.constant 0 : index
    %9 = vector.load %arg15[%c0_2, %c0_3, %8, %c0_4] : memref<3x4x16x8xf32, #tpu.memory_space<vmem>>, vector<1x4x8x8xf32>
    %10 = vector.shape_cast %9 : vector<1x4x8x8xf32> to vector<4x8x8xf32>
    %cst = arith.constant 0xFF800000 : f32
    %11 = vector.broadcast %cst : f32 to vector<4x8x1xf32>
    %cst_5 = arith.constant 0.000000e+00 : f32
    %12 = vector.broadcast %cst_5 : f32 to vector<4x8x1xf32>
    %cst_6 = arith.constant 0.000000e+00 : f32
    %13 = vector.broadcast %cst_6 : f32 to vector<4x8x8xf32>
    %c0_i32_7 = arith.constant 0 : i32
    %c2_i32 = arith.constant 2 : i32
    %14 = arith.addi %c0_i32_7, %c2_i32 : i32
    %c1_i32 = arith.constant 1 : i32
    %15:3 = scf.for %arg16 = %c0_i32_7 to %14 step %c1_i32 iter_args(%arg17 = %11, %arg18 = %12, %arg19 = %13) -> (vector<4x8x1xf32>, vector<4x8x1xf32>, vector<4x8x8xf32>)  : i32 {
      %c8_i32_48 = arith.constant 8 : i32
      %118 = arith.muli %arg16, %c8_i32_48 : i32
      %119 = tpu.assume_multiple %118, 8 : i32
      %c1 = arith.constant 1 : index
      %c0_49 = arith.constant 0 : index
      %120 = arith.index_cast %119 : i32 to index
      %c0_50 = arith.constant 0 : index
      %121 = vector.load %arg15[%c1, %c0_49, %120, %c0_50] : memref<3x4x16x8xf32, #tpu.memory_space<vmem>>, vector<1x4x8x8xf32>
      %122 = vector.shape_cast %121 : vector<1x4x8x8xf32> to vector<4x8x8xf32>
      %c2 = arith.constant 2 : index
      %c0_51 = arith.constant 0 : index
      %123 = arith.index_cast %119 : i32 to index
      %c0_52 = arith.constant 0 : index
      %124 = vector.load %arg15[%c2, %c0_51, %123, %c0_52] : memref<3x4x16x8xf32, #tpu.memory_space<vmem>>, vector<1x4x8x8xf32>
      %125 = vector.shape_cast %124 : vector<1x4x8x8xf32> to vector<4x8x8xf32>
      "tpu.trace_start"() <{level = 10 : i32, message = "hqd,hkd->hqk"}> : () -> ()
      %cst_53 = arith.constant dense<0.000000e+00> : vector<4x8x8xf32>
      %126 = tpu.matmul %10, %122, %cst_53 {dimension_numbers = #tpu.dot_dimension_numbers<[2], [2], [1], [1], [0, 0, 0, 1, 1, 1], [0], [0]>} : vector<4x8x8xf32>, vector<4x8x8xf32>, vector<4x8x8xf32> -> vector<4x8x8xf32>
      "tpu.trace_stop"() : () -> ()
      %cst_54 = arith.constant dense<0xFF800000> : vector<4x8xf32>
      %127 = vector.multi_reduction <maximumf>, %126, %cst_54 [2] : vector<4x8x8xf32> to vector<4x8xf32>
      %128 = vector.shape_cast %127 : vector<4x8xf32> to vector<4x8x1xf32>
      %129 = arith.maximumf %arg17, %128 : vector<4x8x1xf32>
      %130 = arith.subf %arg17, %129 : vector<4x8x1xf32>
      %131 = math.exp %130 : vector<4x8x1xf32>
      %132 = vector.broadcast %129 : vector<4x8x1xf32> to vector<4x8x8xf32>
      %133 = arith.subf %126, %132 : vector<4x8x8xf32>
      %134 = math.exp %133 : vector<4x8x8xf32>
      %135 = arith.mulf %131, %arg18 : vector<4x8x1xf32>
      %cst_55 = arith.constant dense<0.000000e+00> : vector<4x8xf32>
      %136 = vector.multi_reduction <add>, %134, %cst_55 [2] : vector<4x8x8xf32> to vector<4x8xf32>
      %137 = vector.shape_cast %136 : vector<4x8xf32> to vector<4x8x1xf32>
      %138 = arith.addf %135, %137 : vector<4x8x1xf32>
      %139 = vector.broadcast %131 : vector<4x8x1xf32> to vector<4x8x8xf32>
      %140 = arith.mulf %139, %arg19 : vector<4x8x8xf32>
      "tpu.trace_start"() <{level = 10 : i32, message = "hqk,hkd->hqd"}> : () -> ()
      %cst_56 = arith.constant dense<0.000000e+00> : vector<4x8x8xf32>
      %141 = tpu.matmul %134, %125, %cst_56 {dimension_numbers = #tpu.dot_dimension_numbers<[2], [1], [1], [2], [0, 0, 0, 1, 1, 2], [0], [0]>} : vector<4x8x8xf32>, vector<4x8x8xf32>, vector<4x8x8xf32> -> vector<4x8x8xf32>
      "tpu.trace_stop"() : () -> ()
      %142 = arith.addf %140, %141 : vector<4x8x8xf32>
      scf.yield %129, %138, %142 : vector<4x8x1xf32>, vector<4x8x1xf32>, vector<4x8x8xf32>
    }
    %c2_i32_8 = arith.constant 2 : i32
    %16 = tpu.reciprocal %15#1 {approx = true} : vector<4x8x1xf32> -> vector<4x8x1xf32>
    %17 = vector.broadcast %16 : vector<4x8x1xf32> to vector<4x8x8xf32>
    %18 = arith.mulf %15#2, %17 : vector<4x8x8xf32>
    %19 = vector.extract_strided_slice %18 {offsets = [0, 0, 0], sizes = [1, 8, 8], strides = [1, 1, 1]} : vector<4x8x8xf32> to vector<1x8x8xf32>
    %20 = vector.shape_cast %19 : vector<1x8x8xf32> to vector<8x8xf32>
    %21 = vector.extract_strided_slice %18 {offsets = [1, 0, 0], sizes = [1, 8, 8], strides = [1, 1, 1]} : vector<4x8x8xf32> to vector<1x8x8xf32>
    %22 = vector.shape_cast %21 : vector<1x8x8xf32> to vector<8x8xf32>
    %23 = vector.extract_strided_slice %18 {offsets = [2, 0, 0], sizes = [1, 8, 8], strides = [1, 1, 1]} : vector<4x8x8xf32> to vector<1x8x8xf32>
    %24 = vector.shape_cast %23 : vector<1x8x8xf32> to vector<8x8xf32>
    %25 = vector.extract_strided_slice %18 {offsets = [3, 0, 0], sizes = [1, 8, 8], strides = [1, 1, 1]} : vector<4x8x8xf32> to vector<1x8x8xf32>
    %26 = vector.shape_cast %25 : vector<1x8x8xf32> to vector<8x8xf32>
    %27 = tpu.concatenate %20, %22, %24, %26 in 1 : vector<8x8xf32>, vector<8x8xf32>, vector<8x8xf32>, vector<8x8xf32> -> vector<8x32xf32>
    %c0_9 = arith.constant 0 : index
    %c0_10 = arith.constant 0 : index
    %28 = vector.load %arg4[%c0_9, %c0_10] : memref<32x32xf32, #tpu.memory_space<vmem>>, vector<32x32xf32>
    %cst_11 = arith.constant dense<0.000000e+00> : vector<8x32xf32>
    %29 = tpu.matmul %27, %28, %cst_11 {dimension_numbers = #tpu.dot_dimension_numbers<[1], [0], [0], [1], [0, 0, 1, 1], [], []>} : vector<8x32xf32>, vector<32x32xf32>, vector<8x32xf32> -> vector<8x32xf32>
    %c0_12 = arith.constant 0 : index
    %c0_13 = arith.constant 0 : index
    %30 = vector.load %arg5[%c0_12, %c0_13] : memref<1x32xf32, #tpu.memory_space<vmem>>, vector<1x32xf32>
    %31 = vector.shape_cast %30 : vector<1x32xf32> to vector<32xf32>
    %32 = vector.shape_cast %31 : vector<32xf32> to vector<1x32xf32>
    %33 = vector.broadcast %32 : vector<1x32xf32> to vector<8x32xf32>
    %34 = arith.addf %29, %33 : vector<8x32xf32>
    %35 = arith.addf %7, %34 : vector<8x32xf32>
    %cst_14 = arith.constant dense<0.000000e+00> : vector<8xf32>
    %36 = vector.multi_reduction <add>, %35, %cst_14 [1] : vector<8x32xf32> to vector<8xf32>
    %37 = vector.shape_cast %36 : vector<8xf32> to vector<8x1xf32>
    %cst_15 = arith.constant 3.200000e+01 : f32
    %38 = vector.broadcast %cst_15 : f32 to vector<8x1xf32>
    %39 = arith.divf %37, %38 : vector<8x1xf32>
    %40 = vector.broadcast %39 : vector<8x1xf32> to vector<8x32xf32>
    %41 = arith.subf %35, %40 : vector<8x32xf32>
    %42 = arith.mulf %41, %41 : vector<8x32xf32>
    %cst_16 = arith.constant dense<0.000000e+00> : vector<8xf32>
    %43 = vector.multi_reduction <add>, %42, %cst_16 [1] : vector<8x32xf32> to vector<8xf32>
    %44 = vector.shape_cast %43 : vector<8xf32> to vector<8x1xf32>
    %cst_17 = arith.constant 3.200000e+01 : f32
    %45 = vector.broadcast %cst_17 : f32 to vector<8x1xf32>
    %46 = arith.divf %44, %45 : vector<8x1xf32>
    %47 = vector.broadcast %39 : vector<8x1xf32> to vector<8x32xf32>
    %48 = arith.subf %35, %47 : vector<8x32xf32>
    %cst_18 = arith.constant 9.99999974E-6 : f32
    %49 = vector.broadcast %cst_18 : f32 to vector<8x1xf32>
    %50 = arith.addf %46, %49 : vector<8x1xf32>
    %51 = math.rsqrt %50 : vector<8x1xf32>
    %52 = vector.broadcast %51 : vector<8x1xf32> to vector<8x32xf32>
    %53 = arith.mulf %48, %52 : vector<8x32xf32>
    %c0_19 = arith.constant 0 : index
    %c0_20 = arith.constant 0 : index
    %54 = vector.load %arg10[%c0_19, %c0_20] : memref<1x32xf32, #tpu.memory_space<vmem>>, vector<1x32xf32>
    %55 = vector.shape_cast %54 : vector<1x32xf32> to vector<32xf32>
    %56 = vector.shape_cast %55 : vector<32xf32> to vector<1x32xf32>
    %57 = vector.broadcast %56 : vector<1x32xf32> to vector<8x32xf32>
    %58 = arith.mulf %53, %57 : vector<8x32xf32>
    %c0_21 = arith.constant 0 : index
    %c0_22 = arith.constant 0 : index
    %59 = vector.load %arg11[%c0_21, %c0_22] : memref<1x32xf32, #tpu.memory_space<vmem>>, vector<1x32xf32>
    %60 = vector.shape_cast %59 : vector<1x32xf32> to vector<32xf32>
    %61 = vector.shape_cast %60 : vector<32xf32> to vector<1x32xf32>
    %62 = vector.broadcast %61 : vector<1x32xf32> to vector<8x32xf32>
    %63 = arith.addf %58, %62 : vector<8x32xf32>
    %c0_23 = arith.constant 0 : index
    %c0_24 = arith.constant 0 : index
    %64 = vector.load %arg6[%c0_23, %c0_24] : memref<32x64xf32, #tpu.memory_space<vmem>>, vector<32x64xf32>
    %cst_25 = arith.constant dense<0.000000e+00> : vector<8x64xf32>
    %65 = tpu.matmul %63, %64, %cst_25 {dimension_numbers = #tpu.dot_dimension_numbers<[1], [0], [0], [1], [0, 0, 1, 1], [], []>} : vector<8x32xf32>, vector<32x64xf32>, vector<8x64xf32> -> vector<8x64xf32>
    %c0_26 = arith.constant 0 : index
    %c0_27 = arith.constant 0 : index
    %66 = vector.load %arg7[%c0_26, %c0_27] : memref<1x64xf32, #tpu.memory_space<vmem>>, vector<1x64xf32>
    %67 = vector.shape_cast %66 : vector<1x64xf32> to vector<64xf32>
    %68 = vector.shape_cast %67 : vector<64xf32> to vector<1x64xf32>
    %69 = vector.broadcast %68 : vector<1x64xf32> to vector<8x64xf32>
    %70 = arith.addf %65, %69 : vector<8x64xf32>
    %cst_28 = arith.constant 5.000000e-01 : f32
    %71 = vector.broadcast %cst_28 : f32 to vector<8x64xf32>
    %72 = arith.mulf %71, %70 : vector<8x64xf32>
    %cst_29 = arith.constant 0.707106769 : f32
    %73 = vector.broadcast %cst_29 : f32 to vector<8x64xf32>
    %74 = arith.mulf %70, %73 : vector<8x64xf32>
    %75 = math.erf %74 : vector<8x64xf32>
    %cst_30 = arith.constant 1.000000e+00 : f32
    %76 = vector.broadcast %cst_30 : f32 to vector<8x64xf32>
    %77 = arith.addf %76, %75 : vector<8x64xf32>
    %78 = arith.mulf %72, %77 : vector<8x64xf32>
    %c0_31 = arith.constant 0 : index
    %c0_32 = arith.constant 0 : index
    %79 = vector.load %arg8[%c0_31, %c0_32] : memref<64x32xf32, #tpu.memory_space<vmem>>, vector<64x32xf32>
    %cst_33 = arith.constant dense<0.000000e+00> : vector<8x32xf32>
    %80 = tpu.matmul %78, %79, %cst_33 {dimension_numbers = #tpu.dot_dimension_numbers<[1], [0], [0], [1], [0, 0, 1, 1], [], []>} : vector<8x64xf32>, vector<64x32xf32>, vector<8x32xf32> -> vector<8x32xf32>
    %c0_34 = arith.constant 0 : index
    %c0_35 = arith.constant 0 : index
    %81 = vector.load %arg9[%c0_34, %c0_35] : memref<1x32xf32, #tpu.memory_space<vmem>>, vector<1x32xf32>
    %82 = vector.shape_cast %81 : vector<1x32xf32> to vector<32xf32>
    %83 = vector.shape_cast %82 : vector<32xf32> to vector<1x32xf32>
    %84 = vector.broadcast %83 : vector<1x32xf32> to vector<8x32xf32>
    %85 = arith.addf %80, %84 : vector<8x32xf32>
    %86 = arith.addf %63, %85 : vector<8x32xf32>
    %cst_36 = arith.constant dense<0.000000e+00> : vector<8xf32>
    %87 = vector.multi_reduction <add>, %86, %cst_36 [1] : vector<8x32xf32> to vector<8xf32>
    %88 = vector.shape_cast %87 : vector<8xf32> to vector<8x1xf32>
    %cst_37 = arith.constant 3.200000e+01 : f32
    %89 = vector.broadcast %cst_37 : f32 to vector<8x1xf32>
    %90 = arith.divf %88, %89 : vector<8x1xf32>
    %91 = vector.broadcast %90 : vector<8x1xf32> to vector<8x32xf32>
    %92 = arith.subf %86, %91 : vector<8x32xf32>
    %93 = arith.mulf %92, %92 : vector<8x32xf32>
    %cst_38 = arith.constant dense<0.000000e+00> : vector<8xf32>
    %94 = vector.multi_reduction <add>, %93, %cst_38 [1] : vector<8x32xf32> to vector<8xf32>
    %95 = vector.shape_cast %94 : vector<8xf32> to vector<8x1xf32>
    %cst_39 = arith.constant 3.200000e+01 : f32
    %96 = vector.broadcast %cst_39 : f32 to vector<8x1xf32>
    %97 = arith.divf %95, %96 : vector<8x1xf32>
    %98 = vector.broadcast %90 : vector<8x1xf32> to vector<8x32xf32>
    %99 = arith.subf %86, %98 : vector<8x32xf32>
    %cst_40 = arith.constant 9.99999974E-6 : f32
    %100 = vector.broadcast %cst_40 : f32 to vector<8x1xf32>
    %101 = arith.addf %97, %100 : vector<8x1xf32>
    %102 = math.rsqrt %101 : vector<8x1xf32>
    %103 = vector.broadcast %102 : vector<8x1xf32> to vector<8x32xf32>
    %104 = arith.mulf %99, %103 : vector<8x32xf32>
    %c0_41 = arith.constant 0 : index
    %c0_42 = arith.constant 0 : index
    %105 = vector.load %arg12[%c0_41, %c0_42] : memref<1x32xf32, #tpu.memory_space<vmem>>, vector<1x32xf32>
    %106 = vector.shape_cast %105 : vector<1x32xf32> to vector<32xf32>
    %107 = vector.shape_cast %106 : vector<32xf32> to vector<1x32xf32>
    %108 = vector.broadcast %107 : vector<1x32xf32> to vector<8x32xf32>
    %109 = arith.mulf %104, %108 : vector<8x32xf32>
    %c0_43 = arith.constant 0 : index
    %c0_44 = arith.constant 0 : index
    %110 = vector.load %arg13[%c0_43, %c0_44] : memref<1x32xf32, #tpu.memory_space<vmem>>, vector<1x32xf32>
    %111 = vector.shape_cast %110 : vector<1x32xf32> to vector<32xf32>
    %112 = vector.shape_cast %111 : vector<32xf32> to vector<1x32xf32>
    %113 = vector.broadcast %112 : vector<1x32xf32> to vector<8x32xf32>
    %114 = arith.addf %109, %113 : vector<8x32xf32>
    %c0_45 = arith.constant 0 : index
    %c0_46 = arith.constant 0 : index
    %c0_47 = arith.constant 0 : index
    %115 = vector.load %arg14[%c0_45, %c0_46, %c0_47] : memref<1x8x32xf32, #tpu.memory_space<vmem>>, vector<1x8x32xf32>
    %116 = vector.shape_cast %115 : vector<1x8x32xf32> to vector<8x32xf32>
    %117 = vector.shape_cast %114 : vector<8x32xf32> to vector<1x8x32xf32>
    tpu.vector_store %arg14[%c0_45, %c0_46, %c0_47], %117 {strides = array<i32>} : memref<1x8x32xf32, #tpu.memory_space<vmem>>, vector<1x8x32xf32>,
    return
  }
  func.func @transform_0(%arg0: i32, %arg1: i32) -> (i32, i32, i32) {
    %c0_i32 = arith.constant 0 : i32
    %c0_i32_0 = arith.constant 0 : i32
    %c0_i32_1 = arith.constant 0 : i32
    return %arg0, %c0_i32, %c0_i32_0 : i32, i32, i32
  }
  func.func @transform_1(%arg0: i32, %arg1: i32) -> (i32, i32) {
    %c0_i32 = arith.constant 0 : i32
    %c0_i32_0 = arith.constant 0 : i32
    %c0_i32_1 = arith.constant 0 : i32
    return %c0_i32, %c0_i32_0 : i32, i32
  }
  func.func @transform_2(%arg0: i32, %arg1: i32) -> (i32, i32) {
    %c0_i32 = arith.constant 0 : i32
    %c0_i32_0 = arith.constant 0 : i32
    %c0_i32_1 = arith.constant 0 : i32
    return %c0_i32, %c0_i32_0 : i32, i32
  }
  func.func @transform_3(%arg0: i32, %arg1: i32) -> (i32, i32) {
    %c0_i32 = arith.constant 0 : i32
    %c0_i32_0 = arith.constant 0 : i32
    %c0_i32_1 = arith.constant 0 : i32
    return %c0_i32, %c0_i32_0 : i32, i32
  }
  func.func @transform_4(%arg0: i32, %arg1: i32) -> (i32, i32) {
    %c0_i32 = arith.constant 0 : i32
    %c0_i32_0 = arith.constant 0 : i32
    %c0_i32_1 = arith.constant 0 : i32
    return %c0_i32, %c0_i32_0 : i32, i32
  }
  func.func @transform_5(%arg0: i32, %arg1: i32) -> (i32, i32) {
    %c0_i32 = arith.constant 0 : i32
    %c0_i32_0 = arith.constant 0 : i32
    %c0_i32_1 = arith.constant 0 : i32
    return %c0_i32, %c0_i32_0 : i32, i32
  }
  func.func @transform_6(%arg0: i32, %arg1: i32) -> (i32, i32) {
    %c0_i32 = arith.constant 0 : i32
    %c0_i32_0 = arith.constant 0 : i32
    %c0_i32_1 = arith.constant 0 : i32
    return %c0_i32, %c0_i32_0 : i32, i32
  }
  func.func @transform_7(%arg0: i32, %arg1: i32) -> (i32, i32) {
    %c0_i32 = arith.constant 0 : i32
    %c0_i32_0 = arith.constant 0 : i32
    %c0_i32_1 = arith.constant 0 : i32
    return %c0_i32, %c0_i32_0 : i32, i32
  }
  func.func @transform_8(%arg0: i32, %arg1: i32) -> (i32, i32) {
    %c0_i32 = arith.constant 0 : i32
    %c0_i32_0 = arith.constant 0 : i32
    %c0_i32_1 = arith.constant 0 : i32
    return %c0_i32, %c0_i32_0 : i32, i32
  }
  func.func @transform_9(%arg0: i32, %arg1: i32) -> (i32, i32) {
    %c0_i32 = arith.constant 0 : i32
    %c0_i32_0 = arith.constant 0 : i32
    %c0_i32_1 = arith.constant 0 : i32
    return %c0_i32, %c0_i32_0 : i32, i32
  }
  func.func @transform_10(%arg0: i32, %arg1: i32) -> (i32, i32) {
    %c0_i32 = arith.constant 0 : i32
    %c0_i32_0 = arith.constant 0 : i32
    %c0_i32_1 = arith.constant 0 : i32
    return %c0_i32, %c0_i32_0 : i32, i32
  }
  func.func @transform_11(%arg0: i32, %arg1: i32) -> (i32, i32) {
    %c0_i32 = arith.constant 0 : i32
    %c0_i32_0 = arith.constant 0 : i32
    %c0_i32_1 = arith.constant 0 : i32
    return %c0_i32, %c0_i32_0 : i32, i32
  }
  func.func @transform_12(%arg0: i32, %arg1: i32) -> (i32, i32, i32) {
    %c0_i32 = arith.constant 0 : i32
    %c0_i32_0 = arith.constant 0 : i32
    return %arg0, %arg1, %c0_i32 : i32, i32, i32
  }
}

module attributes {stable_mosaic.version = 11 : i64} {
  func.func @transformer_block_kernel(%arg0: i32, %arg1: i32, %arg2: memref<1x16x32xf32, #tpu.memory_space<vmem>>, %arg3: memref<32x96xf32, #tpu.memory_space<vmem>>, %arg4: memref<32x32xf32, #tpu.memory_space<vmem>>, %arg5: memref<1x32xf32, #tpu.memory_space<vmem>>, %arg6: memref<32x64xf32, #tpu.memory_space<vmem>>, %arg7: memref<1x64xf32, #tpu.memory_space<vmem>>, %arg8: memref<64x32xf32, #tpu.memory_space<vmem>>, %arg9: memref<1x32xf32, #tpu.memory_space<vmem>>, %arg10: memref<1x32xf32, #tpu.memory_space<vmem>>, %arg11: memref<1x32xf32, #tpu.memory_space<vmem>>, %arg12: memref<1x32xf32, #tpu.memory_space<vmem>>, %arg13: memref<1x32xf32, #tpu.memory_space<vmem>>, %arg14: memref<1x8x32xf32, #tpu.memory_space<vmem>>, %arg15: memref<3x4x16x8xf32, #tpu.memory_space<vmem>>) attributes {dimension_semantics = [#tpu.dimension_semantics<parallel>, #tpu.dimension_semantics<arbitrary>], iteration_bounds = array<i64: 2, 2>, scalar_prefetch = 0 : i64, scratch_operands = 1 : i64, tpu.core_type = #tpu.core_type<tc>, window_params = [{transform_indices = @transform_0, window_bounds = array<i64: 1, 16, 32>}, {pipeline_mode = #tpu.pipeline_mode<synchronous>, transform_indices = @transform_1, window_bounds = array<i64: 32, 96>}, {pipeline_mode = #tpu.pipeline_mode<synchronous>, transform_indices = @transform_2, window_bounds = array<i64: 32, 32>}, {pipeline_mode = #tpu.pipeline_mode<synchronous>, transform_indices = @transform_3, window_bounds = array<i64: 1, 32>}, {pipeline_mode = #tpu.pipeline_mode<synchronous>, transform_indices = @transform_4, window_bounds = array<i64: 32, 64>}, {pipeline_mode = #tpu.pipeline_mode<synchronous>, transform_indices = @transform_5, window_bounds = array<i64: 1, 64>}, {pipeline_mode = #tpu.pipeline_mode<synchronous>, transform_indices = @transform_6, window_bounds = array<i64: 64, 32>}, {pipeline_mode = #tpu.pipeline_mode<synchronous>, transform_indices = @transform_7, window_bounds = array<i64: 1, 32>}, {pipeline_mode = #tpu.pipeline_mode<synchronous>, transform_indices = @transform_8, window_bounds = array<i64: 1, 32>}, {pipeline_mode = #tpu.pipeline_mode<synchronous>, transform_indices = @transform_9, window_bounds = array<i64: 1, 32>}, {pipeline_mode = #tpu.pipeline_mode<synchronous>, transform_indices = @transform_10, window_bounds = array<i64: 1, 32>}, {pipeline_mode = #tpu.pipeline_mode<synchronous>, transform_indices = @transform_11, window_bounds = array<i64: 1, 32>}, {transform_indices = @transform_12, window_bounds = array<i64: 1, 8, 32>}]} {
    %c0_i32 = arith.constant 0 : i32
    %0 = arith.cmpi eq, %arg1, %c0_i32 : i32
    %1 = arith.extui %0 : i1 to i32
    %c0_i32_0 = arith.constant 0 : i32
    %2 = arith.cmpi ne, %1, %c0_i32_0 : i32
    scf.if %2 {
      %c0_48 = arith.constant 0 : index
      %c0_49 = arith.constant 0 : index
      %c0_50 = arith.constant 0 : index
      %118 = vector.load %arg2[%c0_48, %c0_49, %c0_50] : memref<1x16x32xf32, #tpu.memory_space<vmem>>, vector<1x16x32xf32>
      %119 = vector.shape_cast %118 : vector<1x16x32xf32> to vector<16x32xf32>
      %c0_51 = arith.constant 0 : index
      %c0_52 = arith.constant 0 : index
      %120 = vector.load %arg3[%c0_51, %c0_52] : memref<32x96xf32, #tpu.memory_space<vmem>>, vector<32x96xf32>
      %cst_53 = arith.constant dense<0.000000e+00> : vector<16x96xf32>
      %121 = tpu.matmul %119, %120, %cst_53 {dimension_numbers = #tpu.dot_dimension_numbers<[1], [0], [0], [1], [0, 0, 1, 1], [], []>} : vector<16x32xf32>, vector<32x96xf32>, vector<16x96xf32> -> vector<16x96xf32>
      %122 = vector.extract_strided_slice %121 {offsets = [0, 0], sizes = [16, 8], strides = [1, 1]} : vector<16x96xf32> to vector<16x8xf32>
      %c0_54 = arith.constant 0 : index
      %c0_55 = arith.constant 0 : index
      %c0_56 = arith.constant 0 : index
      %c0_57 = arith.constant 0 : index
      %123 = vector.load %arg15[%c0_54, %c0_55, %c0_56, %c0_57] : memref<3x4x16x8xf32, #tpu.memory_space<vmem>>, vector<1x1x16x8xf32>
      %124 = vector.shape_cast %123 : vector<1x1x16x8xf32> to vector<16x8xf32>
      %125 = vector.shape_cast %122 : vector<16x8xf32> to vector<1x1x16x8xf32>
      tpu.vector_store %arg15[%c0_54, %c0_55, %c0_56, %c0_57], %125 {strides = array<i32>} : memref<3x4x16x8xf32, #tpu.memory_space<vmem>>, vector<1x1x16x8xf32>,
      %126 = vector.extract_strided_slice %121 {offsets = [0, 8], sizes = [16, 8], strides = [1, 1]} : vector<16x96xf32> to vector<16x8xf32>
      %c0_58 = arith.constant 0 : index
      %c1 = arith.constant 1 : index
      %c0_59 = arith.constant 0 : index
      %c0_60 = arith.constant 0 : index
      %127 = vector.load %arg15[%c0_58, %c1, %c0_59, %c0_60] : memref<3x4x16x8xf32, #tpu.memory_space<vmem>>, vector<1x1x16x8xf32>
      %128 = vector.shape_cast %127 : vector<1x1x16x8xf32> to vector<16x8xf32>
      %129 = vector.shape_cast %126 : vector<16x8xf32> to vector<1x1x16x8xf32>
      tpu.vector_store %arg15[%c0_58, %c1, %c0_59, %c0_60], %129 {strides = array<i32>} : memref<3x4x16x8xf32, #tpu.memory_space<vmem>>, vector<1x1x16x8xf32>,
      %130 = vector.extract_strided_slice %121 {offsets = [0, 16], sizes = [16, 8], strides = [1, 1]} : vector<16x96xf32> to vector<16x8xf32>
      %c0_61 = arith.constant 0 : index
      %c2 = arith.constant 2 : index
      %c0_62 = arith.constant 0 : index
      %c0_63 = arith.constant 0 : index
      %131 = vector.load %arg15[%c0_61, %c2, %c0_62, %c0_63] : memref<3x4x16x8xf32, #tpu.memory_space<vmem>>, vector<1x1x16x8xf32>
      %132 = vector.shape_cast %131 : vector<1x1x16x8xf32> to vector<16x8xf32>
      %133 = vector.shape_cast %130 : vector<16x8xf32> to vector<1x1x16x8xf32>
      tpu.vector_store %arg15[%c0_61, %c2, %c0_62, %c0_63], %133 {strides = array<i32>} : memref<3x4x16x8xf32, #tpu.memory_space<vmem>>, vector<1x1x16x8xf32>,
      %134 = vector.extract_strided_slice %121 {offsets = [0, 24], sizes = [16, 8], strides = [1, 1]} : vector<16x96xf32> to vector<16x8xf32>
      %c0_64 = arith.constant 0 : index
      %c3 = arith.constant 3 : index
      %c0_65 = arith.constant 0 : index
      %c0_66 = arith.constant 0 : index
      %135 = vector.load %arg15[%c0_64, %c3, %c0_65, %c0_66] : memref<3x4x16x8xf32, #tpu.memory_space<vmem>>, vector<1x1x16x8xf32>
      %136 = vector.shape_cast %135 : vector<1x1x16x8xf32> to vector<16x8xf32>
      %137 = vector.shape_cast %134 : vector<16x8xf32> to vector<1x1x16x8xf32>
      tpu.vector_store %arg15[%c0_64, %c3, %c0_65, %c0_66], %137 {strides = array<i32>} : memref<3x4x16x8xf32, #tpu.memory_space<vmem>>, vector<1x1x16x8xf32>,
      %138 = vector.extract_strided_slice %121 {offsets = [0, 32], sizes = [16, 8], strides = [1, 1]} : vector<16x96xf32> to vector<16x8xf32>
      %c1_67 = arith.constant 1 : index
      %c0_68 = arith.constant 0 : index
      %c0_69 = arith.constant 0 : index
      %c0_70 = arith.constant 0 : index
      %139 = vector.load %arg15[%c1_67, %c0_68, %c0_69, %c0_70] : memref<3x4x16x8xf32, #tpu.memory_space<vmem>>, vector<1x1x16x8xf32>
      %140 = vector.shape_cast %139 : vector<1x1x16x8xf32> to vector<16x8xf32>
      %141 = vector.shape_cast %138 : vector<16x8xf32> to vector<1x1x16x8xf32>
      tpu.vector_store %arg15[%c1_67, %c0_68, %c0_69, %c0_70], %141 {strides = array<i32>} : memref<3x4x16x8xf32, #tpu.memory_space<vmem>>, vector<1x1x16x8xf32>,
      %142 = vector.extract_strided_slice %121 {offsets = [0, 40], sizes = [16, 8], strides = [1, 1]} : vector<16x96xf32> to vector<16x8xf32>
      %c1_71 = arith.constant 1 : index
      %c1_72 = arith.constant 1 : index
      %c0_73 = arith.constant 0 : index
      %c0_74 = arith.constant 0 : index
      %143 = vector.load %arg15[%c1_71, %c1_72, %c0_73, %c0_74] : memref<3x4x16x8xf32, #tpu.memory_space<vmem>>, vector<1x1x16x8xf32>
      %144 = vector.shape_cast %143 : vector<1x1x16x8xf32> to vector<16x8xf32>
      %145 = vector.shape_cast %142 : vector<16x8xf32> to vector<1x1x16x8xf32>
      tpu.vector_store %arg15[%c1_71, %c1_72, %c0_73, %c0_74], %145 {strides = array<i32>} : memref<3x4x16x8xf32, #tpu.memory_space<vmem>>, vector<1x1x16x8xf32>,
      %146 = vector.extract_strided_slice %121 {offsets = [0, 48], sizes = [16, 8], strides = [1, 1]} : vector<16x96xf32> to vector<16x8xf32>
      %c1_75 = arith.constant 1 : index
      %c2_76 = arith.constant 2 : index
      %c0_77 = arith.constant 0 : index
      %c0_78 = arith.constant 0 : index
      %147 = vector.load %arg15[%c1_75, %c2_76, %c0_77, %c0_78] : memref<3x4x16x8xf32, #tpu.memory_space<vmem>>, vector<1x1x16x8xf32>
      %148 = vector.shape_cast %147 : vector<1x1x16x8xf32> to vector<16x8xf32>
      %149 = vector.shape_cast %146 : vector<16x8xf32> to vector<1x1x16x8xf32>
      tpu.vector_store %arg15[%c1_75, %c2_76, %c0_77, %c0_78], %149 {strides = array<i32>} : memref<3x4x16x8xf32, #tpu.memory_space<vmem>>, vector<1x1x16x8xf32>,
      %150 = vector.extract_strided_slice %121 {offsets = [0, 56], sizes = [16, 8], strides = [1, 1]} : vector<16x96xf32> to vector<16x8xf32>
      %c1_79 = arith.constant 1 : index
      %c3_80 = arith.constant 3 : index
      %c0_81 = arith.constant 0 : index
      %c0_82 = arith.constant 0 : index
      %151 = vector.load %arg15[%c1_79, %c3_80, %c0_81, %c0_82] : memref<3x4x16x8xf32, #tpu.memory_space<vmem>>, vector<1x1x16x8xf32>
      %152 = vector.shape_cast %151 : vector<1x1x16x8xf32> to vector<16x8xf32>
      %153 = vector.shape_cast %150 : vector<16x8xf32> to vector<1x1x16x8xf32>
      tpu.vector_store %arg15[%c1_79, %c3_80, %c0_81, %c0_82], %153 {strides = array<i32>} : memref<3x4x16x8xf32, #tpu.memory_space<vmem>>, vector<1x1x16x8xf32>,
      %154 = vector.extract_strided_slice %121 {offsets = [0, 64], sizes = [16, 8], strides = [1, 1]} : vector<16x96xf32> to vector<16x8xf32>
      %c2_83 = arith.constant 2 : index
      %c0_84 = arith.constant 0 : index
      %c0_85 = arith.constant 0 : index
      %c0_86 = arith.constant 0 : index
      %155 = vector.load %arg15[%c2_83, %c0_84, %c0_85, %c0_86] : memref<3x4x16x8xf32, #tpu.memory_space<vmem>>, vector<1x1x16x8xf32>
      %156 = vector.shape_cast %155 : vector<1x1x16x8xf32> to vector<16x8xf32>
      %157 = vector.shape_cast %154 : vector<16x8xf32> to vector<1x1x16x8xf32>
      tpu.vector_store %arg15[%c2_83, %c0_84, %c0_85, %c0_86], %157 {strides = array<i32>} : memref<3x4x16x8xf32, #tpu.memory_space<vmem>>, vector<1x1x16x8xf32>,
      %158 = vector.extract_strided_slice %121 {offsets = [0, 72], sizes = [16, 8], strides = [1, 1]} : vector<16x96xf32> to vector<16x8xf32>
      %c2_87 = arith.constant 2 : index
      %c1_88 = arith.constant 1 : index
      %c0_89 = arith.constant 0 : index
      %c0_90 = arith.constant 0 : index
      %159 = vector.load %arg15[%c2_87, %c1_88, %c0_89, %c0_90] : memref<3x4x16x8xf32, #tpu.memory_space<vmem>>, vector<1x1x16x8xf32>
      %160 = vector.shape_cast %159 : vector<1x1x16x8xf32> to vector<16x8xf32>
      %161 = vector.shape_cast %158 : vector<16x8xf32> to vector<1x1x16x8xf32>
      tpu.vector_store %arg15[%c2_87, %c1_88, %c0_89, %c0_90], %161 {strides = array<i32>} : memref<3x4x16x8xf32, #tpu.memory_space<vmem>>, vector<1x1x16x8xf32>,
      %162 = vector.extract_strided_slice %121 {offsets = [0, 80], sizes = [16, 8], strides = [1, 1]} : vector<16x96xf32> to vector<16x8xf32>
      %c2_91 = arith.constant 2 : index
      %c2_92 = arith.constant 2 : index
      %c0_93 = arith.constant 0 : index
      %c0_94 = arith.constant 0 : index
      %163 = vector.load %arg15[%c2_91, %c2_92, %c0_93, %c0_94] : memref<3x4x16x8xf32, #tpu.memory_space<vmem>>, vector<1x1x16x8xf32>
      %164 = vector.shape_cast %163 : vector<1x1x16x8xf32> to vector<16x8xf32>
      %165 = vector.shape_cast %162 : vector<16x8xf32> to vector<1x1x16x8xf32>
      tpu.vector_store %arg15[%c2_91, %c2_92, %c0_93, %c0_94], %165 {strides = array<i32>} : memref<3x4x16x8xf32, #tpu.memory_space<vmem>>, vector<1x1x16x8xf32>,
      %166 = vector.extract_strided_slice %121 {offsets = [0, 88], sizes = [16, 8], strides = [1, 1]} : vector<16x96xf32> to vector<16x8xf32>
      %c2_95 = arith.constant 2 : index
      %c3_96 = arith.constant 3 : index
      %c0_97 = arith.constant 0 : index
      %c0_98 = arith.constant 0 : index
      %167 = vector.load %arg15[%c2_95, %c3_96, %c0_97, %c0_98] : memref<3x4x16x8xf32, #tpu.memory_space<vmem>>, vector<1x1x16x8xf32>
      %168 = vector.shape_cast %167 : vector<1x1x16x8xf32> to vector<16x8xf32>
      %169 = vector.shape_cast %166 : vector<16x8xf32> to vector<1x1x16x8xf32>
      tpu.vector_store %arg15[%c2_95, %c3_96, %c0_97, %c0_98], %169 {strides = array<i32>} : memref<3x4x16x8xf32, #tpu.memory_space<vmem>>, vector<1x1x16x8xf32>,
    } else {
    }
    %c8_i32 = arith.constant 8 : i32
    %3 = arith.muli %arg1, %c8_i32 : i32
    %4 = tpu.assume_multiple %3, 8 : i32
    %c0 = arith.constant 0 : index
    %5 = arith.index_cast %4 : i32 to index
    %c0_1 = arith.constant 0 : index
    %6 = vector.load %arg2[%c0, %5, %c0_1] : memref<1x16x32xf32, #tpu.memory_space<vmem>>, vector<1x8x32xf32>
    %7 = vector.shape_cast %6 : vector<1x8x32xf32> to vector<8x32xf32>
    %c0_2 = arith.constant 0 : index
    %c0_3 = arith.constant 0 : index
    %8 = arith.index_cast %4 : i32 to index
    %c0_4 = arith.constant 0 : index
    %9 = vector.load %arg15[%c0_2, %c0_3, %8, %c0_4] : memref<3x4x16x8xf32, #tpu.memory_space<vmem>>, vector<1x4x8x8xf32>
    %10 = vector.shape_cast %9 : vector<1x4x8x8xf32> to vector<4x8x8xf32>
    %cst = arith.constant 0xFF800000 : f32
    %11 = vector.broadcast %cst : f32 to vector<4x8x1xf32>
    %cst_5 = arith.constant 0.000000e+00 : f32
    %12 = vector.broadcast %cst_5 : f32 to vector<4x8x1xf32>
    %cst_6 = arith.constant 0.000000e+00 : f32
    %13 = vector.broadcast %cst_6 : f32 to vector<4x8x8xf32>
    %c0_i32_7 = arith.constant 0 : i32
    %c2_i32 = arith.constant 2 : i32
    %14 = arith.addi %c0_i32_7, %c2_i32 : i32
    %c1_i32 = arith.constant 1 : i32
    %15:3 = scf.for %arg16 = %c0_i32_7 to %14 step %c1_i32 iter_args(%arg17 = %11, %arg18 = %12, %arg19 = %13) -> (vector<4x8x1xf32>, vector<4x8x1xf32>, vector<4x8x8xf32>)  : i32 {
      %c8_i32_48 = arith.constant 8 : i32
      %118 = arith.muli %arg16, %c8_i32_48 : i32
      %119 = tpu.assume_multiple %118, 8 : i32
      %c1 = arith.constant 1 : index
      %c0_49 = arith.constant 0 : index
      %120 = arith.index_cast %119 : i32 to index
      %c0_50 = arith.constant 0 : index
      %121 = vector.load %arg15[%c1, %c0_49, %120, %c0_50] : memref<3x4x16x8xf32, #tpu.memory_space<vmem>>, vector<1x4x8x8xf32>
      %122 = vector.shape_cast %121 : vector<1x4x8x8xf32> to vector<4x8x8xf32>
      %c2 = arith.constant 2 : index
      %c0_51 = arith.constant 0 : index
      %123 = arith.index_cast %119 : i32 to index
      %c0_52 = arith.constant 0 : index
      %124 = vector.load %arg15[%c2, %c0_51, %123, %c0_52] : memref<3x4x16x8xf32, #tpu.memory_space<vmem>>, vector<1x4x8x8xf32>
      %125 = vector.shape_cast %124 : vector<1x4x8x8xf32> to vector<4x8x8xf32>
      "tpu.trace_start"() <{level = 10 : i32, message = "hqd,hkd->hqk"}> : () -> ()
      %cst_53 = arith.constant dense<0.000000e+00> : vector<4x8x8xf32>
      %126 = tpu.matmul %10, %122, %cst_53 {dimension_numbers = #tpu.dot_dimension_numbers<[2], [2], [1], [1], [0, 0, 0, 1, 1, 1], [0], [0]>} : vector<4x8x8xf32>, vector<4x8x8xf32>, vector<4x8x8xf32> -> vector<4x8x8xf32>
      "tpu.trace_stop"() : () -> ()
      %cst_54 = arith.constant dense<0xFF800000> : vector<4x8xf32>
      %127 = vector.multi_reduction <maximumf>, %126, %cst_54 [2] : vector<4x8x8xf32> to vector<4x8xf32>
      %128 = vector.shape_cast %127 : vector<4x8xf32> to vector<4x8x1xf32>
      %129 = arith.maximumf %arg17, %128 : vector<4x8x1xf32>
      %130 = arith.subf %arg17, %129 : vector<4x8x1xf32>
      %131 = math.exp %130 : vector<4x8x1xf32>
      %132 = vector.broadcast %129 : vector<4x8x1xf32> to vector<4x8x8xf32>
      %133 = arith.subf %126, %132 : vector<4x8x8xf32>
      %134 = math.exp %133 : vector<4x8x8xf32>
      %135 = arith.mulf %131, %arg18 : vector<4x8x1xf32>
      %cst_55 = arith.constant dense<0.000000e+00> : vector<4x8xf32>
      %136 = vector.multi_reduction <add>, %134, %cst_55 [2] : vector<4x8x8xf32> to vector<4x8xf32>
      %137 = vector.shape_cast %136 : vector<4x8xf32> to vector<4x8x1xf32>
      %138 = arith.addf %135, %137 : vector<4x8x1xf32>
      %139 = vector.broadcast %131 : vector<4x8x1xf32> to vector<4x8x8xf32>
      %140 = arith.mulf %139, %arg19 : vector<4x8x8xf32>
      "tpu.trace_start"() <{level = 10 : i32, message = "hqk,hkd->hqd"}> : () -> ()
      %cst_56 = arith.constant dense<0.000000e+00> : vector<4x8x8xf32>
      %141 = tpu.matmul %134, %125, %cst_56 {dimension_numbers = #tpu.dot_dimension_numbers<[2], [1], [1], [2], [0, 0, 0, 1, 1, 2], [0], [0]>} : vector<4x8x8xf32>, vector<4x8x8xf32>, vector<4x8x8xf32> -> vector<4x8x8xf32>
      "tpu.trace_stop"() : () -> ()
      %142 = arith.addf %140, %141 : vector<4x8x8xf32>
      scf.yield %129, %138, %142 : vector<4x8x1xf32>, vector<4x8x1xf32>, vector<4x8x8xf32>
    }
    %c2_i32_8 = arith.constant 2 : i32
    %16 = tpu.reciprocal %15#1 {approx = true} : vector<4x8x1xf32> -> vector<4x8x1xf32>
    %17 = vector.broadcast %16 : vector<4x8x1xf32> to vector<4x8x8xf32>
    %18 = arith.mulf %15#2, %17 : vector<4x8x8xf32>
    %19 = vector.extract_strided_slice %18 {offsets = [0, 0, 0], sizes = [1, 8, 8], strides = [1, 1, 1]} : vector<4x8x8xf32> to vector<1x8x8xf32>
    %20 = vector.shape_cast %19 : vector<1x8x8xf32> to vector<8x8xf32>
    %21 = vector.extract_strided_slice %18 {offsets = [1, 0, 0], sizes = [1, 8, 8], strides = [1, 1, 1]} : vector<4x8x8xf32> to vector<1x8x8xf32>
    %22 = vector.shape_cast %21 : vector<1x8x8xf32> to vector<8x8xf32>
    %23 = vector.extract_strided_slice %18 {offsets = [2, 0, 0], sizes = [1, 8, 8], strides = [1, 1, 1]} : vector<4x8x8xf32> to vector<1x8x8xf32>
    %24 = vector.shape_cast %23 : vector<1x8x8xf32> to vector<8x8xf32>
    %25 = vector.extract_strided_slice %18 {offsets = [3, 0, 0], sizes = [1, 8, 8], strides = [1, 1, 1]} : vector<4x8x8xf32> to vector<1x8x8xf32>
    %26 = vector.shape_cast %25 : vector<1x8x8xf32> to vector<8x8xf32>
    %27 = tpu.concatenate %20, %22, %24, %26 in 1 : vector<8x8xf32>, vector<8x8xf32>, vector<8x8xf32>, vector<8x8xf32> -> vector<8x32xf32>
    %c0_9 = arith.constant 0 : index
    %c0_10 = arith.constant 0 : index
    %28 = vector.load %arg4[%c0_9, %c0_10] : memref<32x32xf32, #tpu.memory_space<vmem>>, vector<32x32xf32>
    %cst_11 = arith.constant dense<0.000000e+00> : vector<8x32xf32>
    %29 = tpu.matmul %27, %28, %cst_11 {dimension_numbers = #tpu.dot_dimension_numbers<[1], [0], [0], [1], [0, 0, 1, 1], [], []>} : vector<8x32xf32>, vector<32x32xf32>, vector<8x32xf32> -> vector<8x32xf32>
    %c0_12 = arith.constant 0 : index
    %c0_13 = arith.constant 0 : index
    %30 = vector.load %arg5[%c0_12, %c0_13] : memref<1x32xf32, #tpu.memory_space<vmem>>, vector<1x32xf32>
    %31 = vector.shape_cast %30 : vector<1x32xf32> to vector<32xf32>
    %32 = vector.shape_cast %31 : vector<32xf32> to vector<1x32xf32>
    %33 = vector.broadcast %32 : vector<1x32xf32> to vector<8x32xf32>
    %34 = arith.addf %29, %33 : vector<8x32xf32>
    %35 = arith.addf %7, %34 : vector<8x32xf32>
    %cst_14 = arith.constant dense<0.000000e+00> : vector<8xf32>
    %36 = vector.multi_reduction <add>, %35, %cst_14 [1] : vector<8x32xf32> to vector<8xf32>
    %37 = vector.shape_cast %36 : vector<8xf32> to vector<8x1xf32>
    %cst_15 = arith.constant 3.200000e+01 : f32
    %38 = vector.broadcast %cst_15 : f32 to vector<8x1xf32>
    %39 = arith.divf %37, %38 : vector<8x1xf32>
    %40 = vector.broadcast %39 : vector<8x1xf32> to vector<8x32xf32>
    %41 = arith.subf %35, %40 : vector<8x32xf32>
    %42 = arith.mulf %41, %41 : vector<8x32xf32>
    %cst_16 = arith.constant dense<0.000000e+00> : vector<8xf32>
    %43 = vector.multi_reduction <add>, %42, %cst_16 [1] : vector<8x32xf32> to vector<8xf32>
    %44 = vector.shape_cast %43 : vector<8xf32> to vector<8x1xf32>
    %cst_17 = arith.constant 3.200000e+01 : f32
    %45 = vector.broadcast %cst_17 : f32 to vector<8x1xf32>
    %46 = arith.divf %44, %45 : vector<8x1xf32>
    %47 = vector.broadcast %39 : vector<8x1xf32> to vector<8x32xf32>
    %48 = arith.subf %35, %47 : vector<8x32xf32>
    %cst_18 = arith.constant 9.99999974E-6 : f32
    %49 = vector.broadcast %cst_18 : f32 to vector<8x1xf32>
    %50 = arith.addf %46, %49 : vector<8x1xf32>
    %51 = math.rsqrt %50 : vector<8x1xf32>
    %52 = vector.broadcast %51 : vector<8x1xf32> to vector<8x32xf32>
    %53 = arith.mulf %48, %52 : vector<8x32xf32>
    %c0_19 = arith.constant 0 : index
    %c0_20 = arith.constant 0 : index
    %54 = vector.load %arg10[%c0_19, %c0_20] : memref<1x32xf32, #tpu.memory_space<vmem>>, vector<1x32xf32>
    %55 = vector.shape_cast %54 : vector<1x32xf32> to vector<32xf32>
    %56 = vector.shape_cast %55 : vector<32xf32> to vector<1x32xf32>
    %57 = vector.broadcast %56 : vector<1x32xf32> to vector<8x32xf32>
    %58 = arith.mulf %53, %57 : vector<8x32xf32>
    %c0_21 = arith.constant 0 : index
    %c0_22 = arith.constant 0 : index
    %59 = vector.load %arg11[%c0_21, %c0_22] : memref<1x32xf32, #tpu.memory_space<vmem>>, vector<1x32xf32>
    %60 = vector.shape_cast %59 : vector<1x32xf32> to vector<32xf32>
    %61 = vector.shape_cast %60 : vector<32xf32> to vector<1x32xf32>
    %62 = vector.broadcast %61 : vector<1x32xf32> to vector<8x32xf32>
    %63 = arith.addf %58, %62 : vector<8x32xf32>
    %c0_23 = arith.constant 0 : index
    %c0_24 = arith.constant 0 : index
    %64 = vector.load %arg6[%c0_23, %c0_24] : memref<32x64xf32, #tpu.memory_space<vmem>>, vector<32x64xf32>
    %cst_25 = arith.constant dense<0.000000e+00> : vector<8x64xf32>
    %65 = tpu.matmul %63, %64, %cst_25 {dimension_numbers = #tpu.dot_dimension_numbers<[1], [0], [0], [1], [0, 0, 1, 1], [], []>} : vector<8x32xf32>, vector<32x64xf32>, vector<8x64xf32> -> vector<8x64xf32>
    %c0_26 = arith.constant 0 : index
    %c0_27 = arith.constant 0 : index
    %66 = vector.load %arg7[%c0_26, %c0_27] : memref<1x64xf32, #tpu.memory_space<vmem>>, vector<1x64xf32>
    %67 = vector.shape_cast %66 : vector<1x64xf32> to vector<64xf32>
    %68 = vector.shape_cast %67 : vector<64xf32> to vector<1x64xf32>
    %69 = vector.broadcast %68 : vector<1x64xf32> to vector<8x64xf32>
    %70 = arith.addf %65, %69 : vector<8x64xf32>
    %cst_28 = arith.constant 5.000000e-01 : f32
    %71 = vector.broadcast %cst_28 : f32 to vector<8x64xf32>
    %72 = arith.mulf %71, %70 : vector<8x64xf32>
    %cst_29 = arith.constant 0.707106769 : f32
    %73 = vector.broadcast %cst_29 : f32 to vector<8x64xf32>
    %74 = arith.mulf %70, %73 : vector<8x64xf32>
    %75 = math.erf %74 : vector<8x64xf32>
    %cst_30 = arith.constant 1.000000e+00 : f32
    %76 = vector.broadcast %cst_30 : f32 to vector<8x64xf32>
    %77 = arith.addf %76, %75 : vector<8x64xf32>
    %78 = arith.mulf %72, %77 : vector<8x64xf32>
    %c0_31 = arith.constant 0 : index
    %c0_32 = arith.constant 0 : index
    %79 = vector.load %arg8[%c0_31, %c0_32] : memref<64x32xf32, #tpu.memory_space<vmem>>, vector<64x32xf32>
    %cst_33 = arith.constant dense<0.000000e+00> : vector<8x32xf32>
    %80 = tpu.matmul %78, %79, %cst_33 {dimension_numbers = #tpu.dot_dimension_numbers<[1], [0], [0], [1], [0, 0, 1, 1], [], []>} : vector<8x64xf32>, vector<64x32xf32>, vector<8x32xf32> -> vector<8x32xf32>
    %c0_34 = arith.constant 0 : index
    %c0_35 = arith.constant 0 : index
    %81 = vector.load %arg9[%c0_34, %c0_35] : memref<1x32xf32, #tpu.memory_space<vmem>>, vector<1x32xf32>
    %82 = vector.shape_cast %81 : vector<1x32xf32> to vector<32xf32>
    %83 = vector.shape_cast %82 : vector<32xf32> to vector<1x32xf32>
    %84 = vector.broadcast %83 : vector<1x32xf32> to vector<8x32xf32>
    %85 = arith.addf %80, %84 : vector<8x32xf32>
    %86 = arith.addf %63, %85 : vector<8x32xf32>
    %cst_36 = arith.constant dense<0.000000e+00> : vector<8xf32>
    %87 = vector.multi_reduction <add>, %86, %cst_36 [1] : vector<8x32xf32> to vector<8xf32>
    %88 = vector.shape_cast %87 : vector<8xf32> to vector<8x1xf32>
    %cst_37 = arith.constant 3.200000e+01 : f32
    %89 = vector.broadcast %cst_37 : f32 to vector<8x1xf32>
    %90 = arith.divf %88, %89 : vector<8x1xf32>
    %91 = vector.broadcast %90 : vector<8x1xf32> to vector<8x32xf32>
    %92 = arith.subf %86, %91 : vector<8x32xf32>
    %93 = arith.mulf %92, %92 : vector<8x32xf32>
    %cst_38 = arith.constant dense<0.000000e+00> : vector<8xf32>
    %94 = vector.multi_reduction <add>, %93, %cst_38 [1] : vector<8x32xf32> to vector<8xf32>
    %95 = vector.shape_cast %94 : vector<8xf32> to vector<8x1xf32>
    %cst_39 = arith.constant 3.200000e+01 : f32
    %96 = vector.broadcast %cst_39 : f32 to vector<8x1xf32>
    %97 = arith.divf %95, %96 : vector<8x1xf32>
    %98 = vector.broadcast %90 : vector<8x1xf32> to vector<8x32xf32>
    %99 = arith.subf %86, %98 : vector<8x32xf32>
    %cst_40 = arith.constant 9.99999974E-6 : f32
    %100 = vector.broadcast %cst_40 : f32 to vector<8x1xf32>
    %101 = arith.addf %97, %100 : vector<8x1xf32>
    %102 = math.rsqrt %101 : vector<8x1xf32>
    %103 = vector.broadcast %102 : vector<8x1xf32> to vector<8x32xf32>
    %104 = arith.mulf %99, %103 : vector<8x32xf32>
    %c0_41 = arith.constant 0 : index
    %c0_42 = arith.constant 0 : index
    %105 = vector.load %arg12[%c0_41, %c0_42] : memref<1x32xf32, #tpu.memory_space<vmem>>, vector<1x32xf32>
    %106 = vector.shape_cast %105 : vector<1x32xf32> to vector<32xf32>
    %107 = vector.shape_cast %106 : vector<32xf32> to vector<1x32xf32>
    %108 = vector.broadcast %107 : vector<1x32xf32> to vector<8x32xf32>
    %109 = arith.mulf %104, %108 : vector<8x32xf32>
    %c0_43 = arith.constant 0 : index
    %c0_44 = arith.constant 0 : index
    %110 = vector.load %arg13[%c0_43, %c0_44] : memref<1x32xf32, #tpu.memory_space<vmem>>, vector<1x32xf32>
    %111 = vector.shape_cast %110 : vector<1x32xf32> to vector<32xf32>
    %112 = vector.shape_cast %111 : vector<32xf32> to vector<1x32xf32>
    %113 = vector.broadcast %112 : vector<1x32xf32> to vector<8x32xf32>
    %114 = arith.addf %109, %113 : vector<8x32xf32>
    %c0_45 = arith.constant 0 : index
    %c0_46 = arith.constant 0 : index
    %c0_47 = arith.constant 0 : index
    %115 = vector.load %arg14[%c0_45, %c0_46, %c0_47] : memref<1x8x32xf32, #tpu.memory_space<vmem>>, vector<1x8x32xf32>
    %116 = vector.shape_cast %115 : vector<1x8x32xf32> to vector<8x32xf32>
    %117 = vector.shape_cast %114 : vector<8x32xf32> to vector<1x8x32xf32>
    tpu.vector_store %arg14[%c0_45, %c0_46, %c0_47], %117 {strides = array<i32>} : memref<1x8x32xf32, #tpu.memory_space<vmem>>, vector<1x8x32xf32>,
    return
  }
  func.func @transform_0(%arg0: i32, %arg1: i32) -> (i32, i32, i32) {
    %c0_i32 = arith.constant 0 : i32
    %c0_i32_0 = arith.constant 0 : i32
    %c0_i32_1 = arith.constant 0 : i32
    return %arg0, %c0_i32, %c0_i32_0 : i32, i32, i32
  }
  func.func @transform_1(%arg0: i32, %arg1: i32) -> (i32, i32) {
    %c0_i32 = arith.constant 0 : i32
    %c0_i32_0 = arith.constant 0 : i32
    %c0_i32_1 = arith.constant 0 : i32
    return %c0_i32, %c0_i32_0 : i32, i32
  }
  func.func @transform_2(%arg0: i32, %arg1: i32) -> (i32, i32) {
    %c0_i32 = arith.constant 0 : i32
    %c0_i32_0 = arith.constant 0 : i32
    %c0_i32_1 = arith.constant 0 : i32
    return %c0_i32, %c0_i32_0 : i32, i32
  }
  func.func @transform_3(%arg0: i32, %arg1: i32) -> (i32, i32) {
    %c0_i32 = arith.constant 0 : i32
    %c0_i32_0 = arith.constant 0 : i32
    %c0_i32_1 = arith.constant 0 : i32
    return %c0_i32, %c0_i32_0 : i32, i32
  }
  func.func @transform_4(%arg0: i32, %arg1: i32) -> (i32, i32) {
    %c0_i32 = arith.constant 0 : i32
    %c0_i32_0 = arith.constant 0 : i32
    %c0_i32_1 = arith.constant 0 : i32
    return %c0_i32, %c0_i32_0 : i32, i32
  }
  func.func @transform_5(%arg0: i32, %arg1: i32) -> (i32, i32) {
    %c0_i32 = arith.constant 0 : i32
    %c0_i32_0 = arith.constant 0 : i32
    %c0_i32_1 = arith.constant 0 : i32
    return %c0_i32, %c0_i32_0 : i32, i32
  }
  func.func @transform_6(%arg0: i32, %arg1: i32) -> (i32, i32) {
    %c0_i32 = arith.constant 0 : i32
    %c0_i32_0 = arith.constant 0 : i32
    %c0_i32_1 = arith.constant 0 : i32
    return %c0_i32, %c0_i32_0 : i32, i32
  }
  func.func @transform_7(%arg0: i32, %arg1: i32) -> (i32, i32) {
    %c0_i32 = arith.constant 0 : i32
    %c0_i32_0 = arith.constant 0 : i32
    %c0_i32_1 = arith.constant 0 : i32
    return %c0_i32, %c0_i32_0 : i32, i32
  }
  func.func @transform_8(%arg0: i32, %arg1: i32) -> (i32, i32) {
    %c0_i32 = arith.constant 0 : i32
    %c0_i32_0 = arith.constant 0 : i32
    %c0_i32_1 = arith.constant 0 : i32
    return %c0_i32, %c0_i32_0 : i32, i32
  }
  func.func @transform_9(%arg0: i32, %arg1: i32) -> (i32, i32) {
    %c0_i32 = arith.constant 0 : i32
    %c0_i32_0 = arith.constant 0 : i32
    %c0_i32_1 = arith.constant 0 : i32
    return %c0_i32, %c0_i32_0 : i32, i32
  }
  func.func @transform_10(%arg0: i32, %arg1: i32) -> (i32, i32) {
    %c0_i32 = arith.constant 0 : i32
    %c0_i32_0 = arith.constant 0 : i32
    %c0_i32_1 = arith.constant 0 : i32
    return %c0_i32, %c0_i32_0 : i32, i32
  }
  func.func @transform_11(%arg0: i32, %arg1: i32) -> (i32, i32) {
    %c0_i32 = arith.constant 0 : i32
    %c0_i32_0 = arith.constant 0 : i32
    %c0_i32_1 = arith.constant 0 : i32
    return %c0_i32, %c0_i32_0 : i32, i32
  }
  func.func @transform_12(%arg0: i32, %arg1: i32) -> (i32, i32, i32) {
    %c0_i32 = arith.constant 0 : i32
    %c0_i32_0 = arith.constant 0 : i32
    return %arg0, %arg1, %c0_i32 : i32, i32, i32
  }
}

</mosaic_0001>

<bundles_post_ra>
// kernel: tpu_custom_call.1
= control target key start
LH: loop header
LB: loop body
LE: loop exit
PB: predicated region body
PF: predicated region fallthrough
CT: control target
= control target key end

     0   :  { %s3085_s0 = inlined_call_operand.vmem [shape: f32[2,16,32], index: 0, kind: input, shape index: {}]   ;;  %s3086_s1 = inlined_call_operand.vmem [shape: f32[32,96], index: 1, kind: input, shape index: {}]   ;;  %s3087_s2 = inlined_call_operand.vmem [shape: f32[32,32], index: 2, kind: input, shape index: {}]   ;;  %s3088_s3 = inlined_call_operand.vmem [shape: f32[1,32], index: 3, kind: input, shape index: {}]   ;;  %s3089_s4 = inlined_call_operand.hbm [shape: f32[32,64], index: 4, kind: input, shape index: {}]   ;;  %s3090_s5 = inlined_call_operand.vmem [shape: f32[1,64], index: 5, kind: input, shape index: {}]   ;;  %s3091_s6 = inlined_call_operand.vmem [shape: f32[64,32], index: 6, kind: input, shape index: {}]   ;;  %s3092_s7 = inlined_call_operand.vmem [shape: f32[1,32], index: 7, kind: input, shape index: {}]   ;;  %s3093_s8 = inlined_call_operand.vmem [shape: f32[1,32], index: 8, kind: input, shape index: {}]   ;;  %s3094_s9 = inlined_call_operand.vmem [shape: f32[1,32], index: 9, kind: input, shape index: {}]   ;;  %s3095_s10 = inlined_call_operand.vmem [shape: f32[1,32], index: 10, kind: input, shape index: {}]   ;;  %s3096_s11 = inlined_call_operand.vmem [shape: f32[1,32], index: 11, kind: input, shape index: {}]   ;;  %s3097_s12 = inlined_call_operand.hbm [shape: f32[2,16,32], index: 12, kind: output, shape index: {}]  }
   0x1   :  { %3105 = sst [smem:[#allocation14_spill]] %s3085_s0 }
   0x2   :  { %3106 = sst [smem:[#allocation15_spill]] %s3089_s4 }
   0x3   :  { %17 = vsyncpa [#allocation4], 0 }
   0x4   :  { %18 = vsyncpa [#allocation5], 0 }
   0x5   :  { %20 = vsyncpa [#allocation5 + $0x1], 0  ;;  %s2579_s21 = smov 0   ;;  %s2581_s22 = smov 0  }
   0x6   :  { %s2583_s23 = smov 0   ;;  %s2585_s24 = smov 0  }
   0x7   :  { %s2587_s25 = smov 0   ;;  %s2589_s26 = smov 0  }
   0x8   :  { %s2591_s27 = smov 0   ;;  %s2593_s28 = smov 0  }
   0x9 LB: > { %3107 = sst [smem:[#allocation9_spill]] %s2410_s21  ;;  %s1843_s29 = sadd.s32 4294967295, %s2438_s28   ;;  %s2438_s28 = sphi %s2593_s28, %s26_s28   ;;  %s2434_s27 = sphi %s2591_s27, %s3147_s27   ;;  %s2430_s26 = sphi %s2589_s26, %s3141_s26   ;;  %s2426_s25 = sphi %s2587_s25, %s3146_s25   ;;  %s2422_s24 = sphi %s2585_s24, %s3140_s24   ;;  %s2418_s23 = sphi %s2583_s23, %s3145_s23   ;;  %s2414_s22 = sphi %s2581_s22, %s3144_s22   ;;  %s2410_s21 = sphi %s2579_s21, %s3143_s21  }
   0xa   : > { %3108 = sst [smem:[#allocation10_spill]] %s2430_s26  ;;  %s1844_s30 = sadd.s32 4294967294, %s2438_s28  }
   0xb   : > { %s35_s13 = sadd.s32 1, %s2430_s26  ;;  %s38_s14 = sadd.s32 1, %s2434_s27 }
   0xc   : > { %p36_p0 = scmp.ge.s32.totalorder %s35_s13, 2  ;;  %s304_s15 = sadd.s32 1, %s2418_s23 }
   0xd   : > { %p314_p1 = scmp.ne.s32.totalorder %s2418_s23, %s2414_s22  ;;  %p315_p2 = scmp.eq.s32.totalorder %s1843_s29, 3 }
   0xe   : > { %s3149_s13 = smov (%p36_p0, %s35_s13), 0  ;;  %s3151_s14 = smov (!%p36_p0, %s38_s14), %s2434_s27 }
   0xf   : > { %3109 = sst [smem:[#allocation11_spill]] %s3149_s13  ;;  %s300_s16 = ssub.s32 %s2430_s26, %s3149_s13 }
  0x10   : > { %p2631_p3 = por %p315_p2, %p314_p1  ;;  %p40_p4 = scmp.ge.s32.totalorder %s3151_s14, 2 }
  0x11   : > { %p320_p5 = scmp.ne.s32.totalorder %s2414_s22, %s2410_s21  ;;  %p321_p6 = scmp.eq.s32.totalorder %s1844_s30, 3 }
  0x12   : > { %p1845_p7 = scmp.ge.s32.totalorder %s2438_s28, 1  ;;  %s3153_s14 = smov (%p40_p4, %s3151_s14), 0 }
  0x13   : > { %3111 = sst [smem:[#allocation12_spill]] %s3153_s14  ;;  %p2640_p8 = por %p321_p6, %p320_p5 }
  0x14   : > { %p328_p9 = scmp.lt.s32.totalorder %s2438_s28, 5  ;;  %s299_s19 = ssub.s32 %s2434_s27, %s3153_s14 }
  0x15   : > { %s3112_s18 = scalar_select %p2640_p8, 1, 0 }
  0x16   : > { %s301_s20 = sor.u32 %s300_s16, %s299_s19  ;;  %p2647_p10 = pnand %p1845_p7, %p328_p9 }
  0x17   : > { %3113 = sst [smem:[#allocation13_spill]] %s3112_s18  ;;  %p302_p11 = scmp.eq.s32.totalorder %s301_s20, 0 }
  0x18   : > { %p2651_p12 = scmp.eq.s32.totalorder %s1843_s29, 0  ;;  %p2034_p13 = pneg %p2647_p10 }
  0x19   : > { %s2658_s30 = scalar_select %p302_p11, %s2418_s23, %s304_s15  }
  0x1a   : > { %s2492_s21 = smov [#allocation3]   ;;  %p2662_p0 = pnand %p2651_p12, %p2034_p13 }
  0x1b   : > { %s349_s18 = sshll.u32 %s2492_s21, 4  ;;  %s350_s18 = int_to_ptr.vmem [resolvable:$true] %s349_s18 }
  0x1c   : > { %p2266_p1 = pneg %p2662_p0  ;;  %s2275_s29 = scalar_lea.vmem %s350_s18, 512 }
  0x1d   : > { %p2276_p2 = scmp.ne.s32.totalorder %s350_s18, %s2275_s29  ;;  %p2283_p6 = scmp.lt.s32.totalorder %s350_s18, %s350_s18 }
  0x1e   : > { %p2284_p7 = scmp.lt.s32.totalorder %s2275_s29, %s2275_s29 }
  0x1f   : > { %p2278_p4 = pnand %p2276_p2, %p2266_p1 }
  0x20   : > { %p2285_p9 = por %p2284_p7, %p2283_p6 }
  0x21   : > { %p2279_p5 = pneg %p2278_p4 }
  0x23   : > { %p2286_p11 = pnand %p2285_p9, %p2279_p5 }
  0x25   : > { %2289 = shalt.err (!%p2286_p11)
}
  0x26   : > { %s2493_s15 = smov 128   ;;  %s2494_s21 = smov 8  }
  0x27   : > { %s3117_s4 = sld [smem:[#allocation15_spill]] }
  0x29   : > { %394 = sbr.rel (%p2647_p10) target bundleno = 2346 (0x92a), region = 68 }
  0x2d   : > { %2037 = dma.hbm_to_vmem [thread:$0]  (!%p2662_p0), %s3117_s4, 512, %s350_s18, [#allocation4], %s2493_s15, %s2493_s15, %s2494_s21  }
  0x2e   : > { %2401 = dma.done.wait (%p2651_p12), [#allocation4], 512  }
  0x2f   : > { %2403 = vsyncadd (%p2651_p12), [#allocation4], 4294966784  ;;  %s3102_s29 = sand.u32 1, %s2414_s22   ;;  %p436_p13 = scmp.lt.s32.totalorder %s2426_s25, 1 }
  0x30   : > { %s2683_s16 = sshll.u32 %s3102_s29, 3  ;;  %s3118_s0 = sld [smem:[#allocation14_spill]] }
  0x31   : > { %s437_s18 = scalar_select %p436_p13, %s2426_s25, 1 }
  0x32   : > { %p1853_p10 = scmp.ne.s32.totalorder %s2422_s24, 0 }
  0x33   : > { %s1894_s15 = sshll.u32 %s437_s18, 4  ;;  %s3104_s14 = smov (!%p1853_p10), 112  }
  0x34   : > { %444 = sbr.rel (%p1853_p10) target bundleno = 415 (0x19f), region = 76  ;;  %s2496_s29 = smov (!%p1853_p10), 120  }
  0x35   : > { %s2497_s21 = smov (!%p1853_p10), 104   ;;  %s2498_s26 = smov (!%p1853_p10), 96  }
  0x36   : > { %s2689_s19 = scalar_lea.vmem %s3118_s0, %s1894_s15  ;;  %s2499_s18 = smov (!%p1853_p10), 88  }
  0x37   : > { %s2500_s15 = smov (!%p1853_p10), 80   ;;  %s2501_s13 = smov (!%p1853_p10), 72  }
  0x38   : > { %s2502_s4 = smov (!%p1853_p10), 64   ;;  %s2503_s20 = smov (!%p1853_p10), 56  }
  0x39   : > { %v450_v0 = vld [vmem:[%s3086_s1 + $0x18] sm:$0xff]  ;;  %v449_v1 = vld [vmem:[%s3086_s1 + $0x10] sm:$0xff]  ;;  %vm451_vm0 = vcmask 261120   ;;  %v445_v2 = vld [vmem:[%s2689_s19] sm:$0xff]  ;;  %vm533_vm1 = vcmask 64512  }
  0x3a   : > { %1936 = vmatprep.subr.mxu0 %v450_v0  ;;  %v448_v3 = vld [vmem:[%s3086_s1 + $0x8] sm:$0xff]  ;;  %1944 = vmatprep.mubr.msk.f32.mxu0 %vm451_vm0, %v445_v2  ;;  %v447_v4 = vld [vmem:[%s3086_s1] sm:$0xff] }
  0x3b   : > { %1937 = vmatpush3.msra.mxu0 %v450_v0  ;;  %v446_v5 = vld [vmem:[%s2689_s19 + $0x8] sm:$0xff] }
  0x3c   : > { %1938 = vmatprep.subr.mxu0 %v449_v1 }
  0x3d   : > { %1939 = vmatpush3.msra.mxu0 %v449_v1 }
  0x3e   : > { %1940 = vmatprep.subr.mxu0 %v448_v3 }
  0x3f   : > { %1941 = vmatpush3.msra.mxu0 %v448_v3 }
  0x40   : > { %1942 = vmatprep.subr.mxu0 %v447_v4 }
  0x41   : > { %1943 = vmatpush3.msra.mxu0 %v447_v4 }
  0x42   : > { %1945 = vmatmul.mubr.msk.f32.vlgmr.msra.gmra.mxu0 %vm451_vm0, %v446_v5 }
 0x102   : > { %v1946_v6 = vpop.f32.mrf.mxu0 }
 0x103   : > { %535 = vst.msk [vmem:[#allocation2 + $0x8] sm:$0xff] %vm533_vm1, %v1946_v6  ;;  %549 = vrot.lane.b32.xlu1 %v1946_v6, %s3104_s14  ;;  %540 = vrot.lane.b32.xlu0 %v1946_v6, %s2496_s29  ;;  %s2504_s14 = smov 48  }
 0x104   : > { %v524_v7 = vpop.f32.mrf.mxu0 }
 0x105   : > { %534 = vst.msk [vmem:[#allocation2] sm:$0xff] %vm533_vm1, %v524_v7 }
 0x107   : > { %558 = vrot.lane.b32.xlu1 %v1946_v6, %s2497_s21  ;;  %538 = vrot.lane.b32.xlu0 %v524_v7, %s2496_s29  ;;  %s3119_s29 = smov 112  }
 0x10b   : > { %567 = vrot.lane.b32.xlu1 %v1946_v6, %s2498_s26  ;;  %556 = vrot.lane.b32.xlu0 %v524_v7, %s2497_s21  ;;  %s2505_s21 = smov 40  }
 0x10f   : > { %576 = vrot.lane.b32.xlu1 %v1946_v6, %s2499_s18  ;;  %565 = vrot.lane.b32.xlu0 %v524_v7, %s2498_s26 }
 0x113   : > { %585 = vrot.lane.b32.xlu1 %v1946_v6, %s2500_s15  ;;  %574 = vrot.lane.b32.xlu0 %v524_v7, %s2499_s18 }
 0x117   : > { %594 = vrot.lane.b32.xlu1 %v1946_v6, %s2501_s13  ;;  %583 = vrot.lane.b32.xlu0 %v524_v7, %s2500_s15 }
 0x11b   : > { %603 = vrot.lane.b32.xlu1 %v1946_v6, %s2502_s4  ;;  %592 = vrot.lane.b32.xlu0 %v524_v7, %s2501_s13 }
 0x11f   : > { %612 = vrot.lane.b32.xlu1 %v1946_v6, %s2503_s20  ;;  %601 = vrot.lane.b32.xlu0 %v524_v7, %s2502_s4 }
 0x123   : > { %621 = vrot.lane.b32.xlu1 %v1946_v6, %s2504_s14  ;;  %610 = vrot.lane.b32.xlu0 %v524_v7, %s2503_s20 }
 0x127   : > { %547 = vrot.lane.b32.xlu1 %v524_v7, %s3119_s29  ;;  %619 = vrot.lane.b32.xlu0 %v524_v7, %s2504_s14 }
 0x12b   : > { %630 = vrot.lane.b32.xlu1 %v1946_v6, %s2505_s21  ;;  %628 = vrot.lane.b32.xlu0 %v524_v7, %s2505_s21 }
 0x175   : > { %v550_v8 = vpop.permute.xlu1 %549  ;;  %v541_v9 = vpop.permute.xlu0 %540 }
 0x176   : > { %555 = vst.msk [vmem:[#allocation2 + $0x28] sm:$0xff] %vm533_vm1, %v550_v8  ;;  %546 = vst.msk [vmem:[#allocation2 + $0x18] sm:$0xff] %vm533_vm1, %v541_v9 }
 0x179   : > { %v559_v10 = vpop.permute.xlu1 %558  ;;  %v539_v11 = vpop.permute.xlu0 %538 }
 0x17a   : > { %564 = vst.msk [vmem:[#allocation2 + $0x38] sm:$0xff] %vm533_vm1, %v559_v10  ;;  %545 = vst.msk [vmem:[#allocation2 + $0x10] sm:$0xff] %vm533_vm1, %v539_v11 }
 0x17d   : > { %v568_v12 = vpop.permute.xlu1 %567  ;;  %v557_v13 = vpop.permute.xlu0 %556 }
 0x17e   : > { %573 = vst.msk [vmem:[#allocation2 + $0x48] sm:$0xff] %vm533_vm1, %v568_v12  ;;  %563 = vst.msk [vmem:[#allocation2 + $0x30] sm:$0xff] %vm533_vm1, %v557_v13 }
 0x181   : > { %v577_v14 = vpop.permute.xlu1 %576  ;;  %v566_v15 = vpop.permute.xlu0 %565 }
 0x182   : > { %582 = vst.msk [vmem:[#allocation2 + $0x58] sm:$0xff] %vm533_vm1, %v577_v14  ;;  %572 = vst.msk [vmem:[#allocation2 + $0x40] sm:$0xff] %vm533_vm1, %v566_v15 }
 0x185   : > { %v586_v16 = vpop.permute.xlu1 %585  ;;  %v575_v17 = vpop.permute.xlu0 %574 }
 0x186   : > { %591 = vst.msk [vmem:[#allocation2 + $0x68] sm:$0xff] %vm533_vm1, %v586_v16  ;;  %581 = vst.msk [vmem:[#allocation2 + $0x50] sm:$0xff] %vm533_vm1, %v575_v17 }
 0x189   : > { %v595_v18 = vpop.permute.xlu1 %594  ;;  %v584_v19 = vpop.permute.xlu0 %583 }
 0x18a   : > { %600 = vst.msk [vmem:[#allocation2 + $0x78] sm:$0xff] %vm533_vm1, %v595_v18  ;;  %590 = vst.msk [vmem:[#allocation2 + $0x60] sm:$0xff] %vm533_vm1, %v584_v19 }
 0x18d   : > { %v604_v20 = vpop.permute.xlu1 %603  ;;  %v593_v21 = vpop.permute.xlu0 %592 }
 0x18e   : > { %609 = vst.msk [vmem:[#allocation2 + $0x88] sm:$0xff] %vm533_vm1, %v604_v20  ;;  %599 = vst.msk [vmem:[#allocation2 + $0x70] sm:$0xff] %vm533_vm1, %v593_v21 }
 0x191   : > { %v613_v22 = vpop.permute.xlu1 %612  ;;  %v602_v23 = vpop.permute.xlu0 %601 }
 0x192   : > { %618 = vst.msk [vmem:[#allocation2 + $0x98] sm:$0xff] %vm533_vm1, %v613_v22  ;;  %608 = vst.msk [vmem:[#allocation2 + $0x80] sm:$0xff] %vm533_vm1, %v602_v23 }
 0x195   : > { %v622_v24 = vpop.permute.xlu1 %621  ;;  %v611_v25 = vpop.permute.xlu0 %610 }
 0x196   : > { %627 = vst.msk [vmem:[#allocation2 + $0xa8] sm:$0xff] %vm533_vm1, %v622_v24  ;;  %617 = vst.msk [vmem:[#allocation2 + $0x90] sm:$0xff] %vm533_vm1, %v611_v25 }
 0x199   : > { %v548_v26 = vpop.permute.xlu1 %547  ;;  %v620_v27 = vpop.permute.xlu0 %619 }
 0x19a   : > { %554 = vst.msk [vmem:[#allocation2 + $0x20] sm:$0xff] %vm533_vm1, %v548_v26  ;;  %626 = vst.msk [vmem:[#allocation2 + $0xa0] sm:$0xff] %vm533_vm1, %v620_v27 }
 0x19d   : > { %v631_v28 = vpop.permute.xlu1 %630  ;;  %v629_v29 = vpop.permute.xlu0 %628 }
 0x19e   : > { %636 = vst.msk [vmem:[#allocation2 + $0xb8] sm:$0xff] %vm533_vm1, %v631_v28  ;;  %635 = vst.msk [vmem:[#allocation2 + $0xb0] sm:$0xff] %vm533_vm1, %v629_v29 }
 0x19f PF: > { %s1856_s20 = sshll.u32 %s2422_s24, 3  ;;  %v2745_v35 = vmov 0.0   ;;  %v2747_v36 = vmov 0.0   ;;  %v2749_v37 = vmov 0.0   ;;  %v2751_v38 = vmov 0.0  }
 0x1a0   : > { %s638_s14 = scalar_lea.vmem %s2689_s19, %s1856_s20  ;;  %s640_s26 = scalar_lea.vmem [#allocation2], %s1856_s20  ;;  %v2753_v39 = vmov 0.0   ;;  %v2755_v40 = vmov 0.0   ;;  %v2757_v41 = vmov 0.0   ;;  %v2759_v42 = vmov 0.0  }
 0x1a1   : > { %v2735_v30 = vld [vmem:[%s638_s14] sm:$0xff]  ;;  %v2761_v43 = vmov -inf   ;;  %v2763_v44 = vmov -inf   ;;  %v2765_v45 = vmov -inf   ;;  %v2767_v46 = vmov -inf   ;;  %s2769_s19 = smov 0  }
 0x1a5   : > { %v2737_v31 = vld [vmem:[%s640_s26] sm:$0xff]  ;;  %v2739_v32 = vld [vmem:[%s640_s26 + $0x10] sm:$0xff] }
 0x1a6   : > { %v2741_v33 = vld [vmem:[%s640_s26 + $0x20] sm:$0xff]  ;;  %v2743_v34 = vld [vmem:[%s640_s26 + $0x30] sm:$0xff] }
 0x1a7 LB: >> { %v2506_v47 = vmov 0.0   ;;  %vm2507_vm2 = vmmov 0   ;;  %s1857_s18 = sshll.u32 %s2490_s19, 3  ;;  %vm676_vm3 = vcmask 64512   ;;  %s650_s19 = sadd.s32 1, %s2490_s19   ;;  %s2490_s19 = sphi %s2769_s19, %s650_s19   ;;  %v2486_v46 = vphi %v2767_v46, %v3134_v46   ;;  %v2482_v45 = vphi %v2765_v45, %v3133_v45   ;;  %v2478_v44 = vphi %v2763_v44, %v3132_v44   ;;  %v2474_v43 = vphi %v2761_v43, %v3131_v43   ;;  %v2470_v42 = vphi %v2759_v42, %v3130_v42   ;;  %v2466_v41 = vphi %v2757_v41, %v3129_v41   ;;  %v2462_v40 = vphi %v2755_v40, %v3128_v40   ;;  %v2458_v39 = vphi %v2753_v39, %v3127_v39   ;;  %v2454_v38 = vphi %v2751_v38, %v3126_v38   ;;  %v2450_v37 = vphi %v2749_v37, %v3125_v37   ;;  %v2446_v36 = vphi %v2747_v36, %v3124_v36   ;;  %v2442_v35 = vphi %v2745_v35, %v3123_v35  }
 0x1a8   : >> { %1947 = vmatprep.subr.mxu0 %v2506_v47  ;;  %1949 = vmatprep.mubr.msk.f32.mxu0 %vm2507_vm2, %v2506_v47  ;;  %s2817_s15 = scalar_lea.vmem [#allocation2], %s1857_s18  ;;  %p2906_p12 = scmp.ge.s32.totalorder %s650_s19, 2  }
 0x1a9   : >> { %1952 = vmatprep.subr.mxu1 %v2506_v47  ;;  %1954 = vmatprep.mubr.msk.f32.mxu1 %vm2507_vm2, %v2506_v47  ;;  %v1858_v48 = vld [vmem:[%s2817_s15 + $0x40] sm:$0xff]  ;;  %v1859_v49 = vld [vmem:[%s2817_s15 + $0x50] sm:$0xff]  ;;  %vm2509_vm4 = vmmov (%p2906_p12), 0   ;;  %s2511_s13 = smov (%p2906_p12), 24   ;;  %s2512_s4 = smov (%p2906_p12), 16   ;;  %vm1363_vm5 = vcmask (%p2906_p12), 130048  }
 0x1aa   : >> { %1948 = vmatpush3.xpose.msk.msra.mxu0 %vm676_vm3, %v1858_v48  ;;  %1953 = vmatpush3.xpose.msk.msra.mxu1 %vm676_vm3, %v1859_v49  ;;  %v1860_v50 = vld [vmem:[%s2817_s15 + $0x60] sm:$0xff]  ;;  %v1861_v51 = vld [vmem:[%s2817_s15 + $0x70] sm:$0xff]  ;;  %vm1365_vm6 = vcmask (%p2906_p12), 195584   ;;  %vm1378_vm7 = vcmask (%p2906_p12), 261120   ;;  %vm1587_vm8 = vcmask (%p2906_p12), 523264   ;;  %s1890_s18 = sshll.u32 (%p2906_p12), %s2426_s25, 1 }
 0x1ab   : >> { %1957 = vmatprep.subr.mxu0 %v2506_v47  ;;  %1962 = vmatprep.subr.mxu1 %v2506_v47  ;;  %v1863_v0 = vld [vmem:[%s2817_s15 + $0x80] sm:$0xff]  ;;  %v1864_v1 = vld [vmem:[%s2817_s15 + $0x90] sm:$0xff]  ;;  %s3135_s14 = scalar_lea.vmem (%p2906_p12), [#allocation6], %s2683_s16 }
 0x1ac   : >> { %v1865_v22 = vld [vmem:[%s2817_s15 + $0xa0] sm:$0xff]  ;;  %v1866_v25 = vld [vmem:[%s2817_s15 + $0xb0] sm:$0xff]  ;;  %s2510_s15 = smov (%p2906_p12), 8   ;;  %s1708_s26 = sshll.u32 (%p2906_p12), %s3135_s14, 4  ;;  %s1709_s26 = int_to_ptr.vmem [resolvable:$true] %s1708_s26 }
 0x1ad   : >> { %1950 = vmatmul.mubr.msk.f32.vlgmr.msra.gmra.mxu0 %vm676_vm3, %v2737_v31  ;;  %1955 = vmatmul.mubr.msk.f32.vlgmr.msra.gmra.mxu1 %vm676_vm3, %v2739_v32  ;;  %v1368_v31 = vld [vmem:[%s3087_s2 + $0x8] sm:$0xff] (%p2906_p12)  ;;  %v1367_v32 = vld [vmem:[%s3087_s2] sm:$0xff] (%p2906_p12) }
 0x1ae   : >> { %1958 = vmatpush3.xpose.msk.msra.mxu0 %vm676_vm3, %v1860_v50  ;;  %1959 = vmatprep.mubr.msk.f32.mxu0 %vm2507_vm2, %v2506_v47 }
 0x1af   : >> { %1963 = vmatpush3.xpose.msk.msra.mxu1 %vm676_vm3, %v1861_v51  ;;  %1964 = vmatprep.mubr.msk.f32.mxu1 %vm2507_vm2, %v2506_v47 }
 0x1b0   : >> { %1967 = vmatprep.subr.mxu0 %v2506_v47  ;;  %1972 = vmatprep.subr.mxu1 %v2506_v47 }
 0x1b1   : >> { %1960 = vmatmul.mubr.msk.f32.vlgmr.msra.gmra.mxu0 %vm676_vm3, %v2741_v33 }
 0x1b2   : >> { %1965 = vmatmul.mubr.msk.f32.vlgmr.msra.gmra.mxu1 %vm676_vm3, %v2743_v34  ;;  %1969 = vmatprep.mubr.msk.f32.mxu0 %vm2507_vm2, %v2506_v47 }
 0x1b3   : >> { %1974 = vmatprep.mubr.msk.f32.mxu1 %vm2507_vm2, %v2506_v47  ;;  %1968 = vmatpush3.msra.mxu0 %v1863_v0 }
 0x1b4   : >> { %1977 = vmatprep.subr.mxu0 %v2506_v47  ;;  %1973 = vmatpush3.msra.mxu1 %v1864_v1 }
 0x1b5   : >> { %1982 = vmatprep.subr.mxu1 %v2506_v47 }
 0x26d   : >> { %v749_v52 = vpop.f32.mrf.mxu0  ;;  %v825_v53 = vpop.f32.mrf.mxu1 }
 0x26e   : >> { %v981_v54 = vsel %vm676_vm3, %v749_v52, -inf  ;;  %v984_v57 = vsel %vm676_vm3, %v825_v53, -inf }
 0x26f   : >> { %982 = vmax.xlane.f32.xlu0 %v981_v54  ;;  %v1951_v55 = vpop.f32.mrf.mxu0  ;;  %v1956_v56 = vpop.f32.mrf.mxu1 }
 0x271   : >> { %v901_v58 = vpop.f32.mrf.mxu0 }
 0x272   : >> { %v987_v59 = vsel %vm676_vm3, %v901_v58, -inf  ;;  %v977_v60 = vpop.f32.mrf.mxu1 }
 0x273   : >> { %985 = vmax.xlane.f32.xlu0 %v984_v57  ;;  %988 = vmax.xlane.f32.xlu1 %v987_v59  ;;  %v1961_v61 = vpop.f32.mrf.mxu0  ;;  %v990_v63 = vsel %vm676_vm3, %v977_v60, -inf }
 0x274   : >> { %v1966_v62 = vpop.f32.mrf.mxu1 }
 0x277   : >> { %991 = vmax.xlane.f32.xlu1 %v990_v63 }
 0x2f8   : >> { %v983_v2 = vpop.xlane.xlu0 %982 }
 0x2f9   : >> { %v2856_v3 = vmax.f32 %v2486_v46, %v983_v2  }
 0x2fb   : >> { %v997_v4 = vsub.f32 %v2486_v46, %v2856_v3  ;;  %v1009_v5 = vsub.f32 %v749_v52, %v2856_v3 }
 0x2fc   : >> { %v986_v6 = vpop.xlane.xlu0 %985  ;;  %v989_v7 = vpop.xlane.xlu1 %988 }
 0x2fd   : >> { %v1013_v8 = vmul.f32 1.442695, %v1009_v5  ;;  %v2862_v9 = vmax.f32 %v2482_v45, %v986_v6   ;;  %v2865_v10 = vmax.f32 %v2478_v44, %v989_v7  }
 0x2ff   : >> { %v998_v11 = vsub.f32 %v2482_v45, %v2862_v9  ;;  %v1010_v12 = vsub.f32 %v825_v53, %v2862_v9  ;;  %v999_v13 = vsub.f32 %v2478_v44, %v2865_v10  ;;  %2234 = vpow2.f32 %v1013_v8 }
 0x300   : >> { %v1011_v14 = vsub.f32 %v901_v58, %v2865_v10  ;;  %v992_v15 = vpop.xlane.xlu1 %991  ;;  %v1001_v45 = vmul.f32 1.442695, %v997_v4 }
 0x301   : >> { %v1015_v16 = vmul.f32 1.442695, %v1010_v12  ;;  %v2874_v17 = vmax.f32 %v2474_v43, %v992_v15   ;;  %v1003_v46 = vmul.f32 1.442695, %v998_v11  ;;  %v1005_v48 = vmul.f32 1.442695, %v999_v13 }
 0x302   : >> { %v1017_v18 = vmul.f32 1.442695, %v1011_v14 }
 0x303   : >> { %v1000_v19 = vsub.f32 %v2474_v43, %v2874_v17  ;;  %v1012_v20 = vsub.f32 %v977_v60, %v2874_v17  ;;  %2236 = vpow2.f32 %v1015_v16  ;;  %v1370_v16 = vld [vmem:[%s3087_s2 + $0x18] sm:$0xff] (%p2906_p12) }
 0x304   : >> { %2238 = vpow2.f32 %v1017_v18 }
 0x305   : >> { %v1019_v21 = vmul.f32 1.442695, %v1012_v20  ;;  %v1007_v49 = vmul.f32 1.442695, %v1000_v19 }
 0x307   : >> { %2240 = vpow2.f32 %v1019_v21 }
 0x308   : >> { %2242 = vpow2.f32 %v1001_v45  ;;  %v3133_v45 = vmov %v2862_v9 }
 0x309   : >> { %2244 = vpow2.f32 %v1003_v46  ;;  %v3134_v46 = vmov %v2856_v3  ;;  %v1369_v3 = vld [vmem:[%s3087_s2 + $0x10] sm:$0xff] (%p2906_p12) }
 0x30a   : >> { %2246 = vpow2.f32 %v1005_v48 }
 0x30b   : >> { %2248 = vpow2.f32 %v1007_v49  ;;  %v1486_v49 = vld [vmem:[#allocation3 + $0x18] sm:$0xff] (%p2906_p12) }
 0x30c   : >> { %v2235_v23 = vpop.eup %2234 }
 0x30d   : >> { %1970 = vmatmul.mubr.msk.f32.vlgmr.msra.gmra.mxu0 %vm676_vm3, %v2235_v23  ;;  %v1025_v24 = vsel %vm676_vm3, %v2235_v23, 0.0 }
 0x30e   : >> { %1026 = vadd.xlane.f32.xlu0 %v1025_v24  ;;  %1978 = vmatpush3.msra.mxu0 %v1865_v22  ;;  %v1879_v24 = vld [vmem:[%s3088_s3] ss:$0 sm:$0xff] (%p2906_p12) }
 0x30f   : >> { %1979 = vmatprep.mubr.msk.f32.mxu0 %vm2507_vm2, %v2506_v47 }
 0x310   : >> { %v2237_v26 = vpop.eup %2236 }
 0x311   : >> { %1975 = vmatmul.mubr.msk.f32.vlgmr.msra.gmra.mxu1 %vm676_vm3, %v2237_v26  ;;  %v1028_v27 = vsel %vm676_vm3, %v2237_v26, 0.0  ;;  %v2239_v28 = vpop.eup %2238 }
 0x312   : >> { %1983 = vmatpush3.msra.mxu1 %v1866_v25  ;;  %1029 = vadd.xlane.f32.xlu1 %v1028_v27  ;;  %v1031_v29 = vsel %vm676_vm3, %v2239_v28, 0.0 }
 0x313   : >> { %1980 = vmatmul.mubr.msk.f32.vlgmr.msra.gmra.mxu0 %vm676_vm3, %v2239_v28  ;;  %1984 = vmatprep.mubr.msk.f32.mxu1 %vm2507_vm2, %v2506_v47 }
 0x314   : >> { %v2241_v43 = vpop.eup %2240  ;;  %1032 = vadd.xlane.f32.xlu0 %v1031_v29 }
 0x315   : >> { %1985 = vmatmul.mubr.msk.f32.vlgmr.msra.gmra.mxu1 %vm676_vm3, %v2241_v43  ;;  %v1034_v44 = vsel %vm676_vm3, %v2241_v43, 0.0  ;;  %v2243_v50 = vpop.eup %2242  ;;  %v3131_v43 = vmov %v2874_v17  ;;  %v2508_v17 = vmov (%p2906_p12), 0.0  }
 0x316   : >> { %1035 = vadd.xlane.f32.xlu1 %v1034_v44  ;;  %v1021_v51 = vmul.f32 %v2470_v42, %v2243_v50  ;;  %v2245_v52 = vpop.eup %2244  ;;  %v1041_v1 = vmul.f32 %v2454_v38, %v2243_v50  ;;  %v3132_v44 = vmov %v2865_v10  ;;  %1987 = vmatprep.subr.mxu1 (%p2906_p12), %v2508_v17  ;;  %v1485_v50 = vld [vmem:[#allocation3 + $0x10] sm:$0xff] (%p2906_p12) }
 0x317   : >> { %v2247_v54 = vpop.eup %2246  ;;  %v1022_v55 = vmul.f32 %v2466_v41, %v2245_v52  ;;  %v1042_v5 = vmul.f32 %v2450_v37, %v2245_v52  ;;  %2009 = vmatprep.subr.mxu0 (%p2906_p12), %v2508_v17  ;;  %1988 = vmatpush3.msra.mxu1 (%p2906_p12), %v1370_v16 }
 0x318   : >> { %v2249_v56 = vpop.eup %2248  ;;  %v1023_v59 = vmul.f32 %v2462_v40, %v2247_v54  ;;  %v1043_v7 = vmul.f32 %v2446_v36, %v2247_v54  ;;  %1989 = vmatprep.subr.mxu1 (%p2906_p12), %v2508_v17  ;;  %1995 = vmatprep.mubr.msk.f32.mxu1 (%p2906_p12), %vm2509_vm4, %v2508_v17 }
 0x319   : >> { %v1024_v62 = vmul.f32 %v2458_v39, %v2249_v56  ;;  %v1044_v12 = vmul.f32 %v2442_v35, %v2249_v56  ;;  %1990 = vmatpush3.msra.mxu1 (%p2906_p12), %v1369_v3  ;;  %2025 = vmatprep.mubr.msk.f32.mxu0 (%p2906_p12), %vm2509_vm4, %v2508_v17 }
 0x31a   : > { %1991 = vmatprep.subr.mxu1 (%p2906_p12), %v2508_v17 }
 0x31b   : > { %1992 = vmatpush3.msra.mxu1 (%p2906_p12), %v1368_v31 }
 0x31c   : > { %1993 = vmatprep.subr.mxu1 (%p2906_p12), %v2508_v17 }
 0x31d   : > { %1994 = vmatpush3.msra.mxu1 (%p2906_p12), %v1367_v32 }
 0x31e   : > { %1998 = vmatprep.subr.mxu1 (%p2906_p12), %v2508_v17 }
 0x397   : >> { %v1027_v47 = vpop.xlane.xlu0 %1026 }
 0x398   : >> { %v2894_v42 = vadd.f32 %v1027_v47, %v1021_v51   ;;  %v1484_v51 = vld [vmem:[#allocation3 + $0x8] sm:$0xff] (%p2906_p12) }
 0x39a   : >> { %v3120_v53 = vmov %v2894_v42 }
 0x39b   : >> { %v1030_v57 = vpop.xlane.xlu1 %1029 }
 0x39c   : >> { %v1038_v58 = vadd.f32 %v1030_v57, %v1022_v55   ;;  %v1881_v55 = vld [vmem:[%s3093_s8] ss:$0 sm:$0xff] (%p2906_p12) }
 0x39d   : >> { %v1033_v60 = vpop.xlane.xlu0 %1032  ;;  %v1882_v57 = vld [vmem:[%s3094_s9] ss:$0 sm:$0xff] (%p2906_p12) }
 0x39e   : >> { %v1039_v61 = vadd.f32 %v1033_v60, %v1023_v59   ;;  %2250 = vrcp.f32 (%p2906_p12), %v1038_v58  ;;  %v1579_v60 = vld [vmem:[%s3091_s6 + $0x38] sm:$0xff] (%p2906_p12) }
 0x39f   : >> { %v1036_v63 = vpop.xlane.xlu1 %1035  ;;  %2010 = vmatpush3.msra.mxu0 (%p2906_p12), %v1579_v60 }
 0x3a0   : >> { %v1040_v0 = vadd.f32 %v1036_v63, %v1024_v62   ;;  %2252 = vrcp.f32 (%p2906_p12), %v1039_v61  ;;  %2011 = vmatprep.subr.mxu0 (%p2906_p12), %v2508_v17  ;;  %v1577_v62 = vld [vmem:[%s3091_s6 + $0x28] sm:$0xff] (%p2906_p12)  ;;  %v1576_v63 = vld [vmem:[%s3091_s6 + $0x20] sm:$0xff] (%p2906_p12) }
 0x3a2   : > { %2254 = vrcp.f32 (%p2906_p12), %v1040_v0 }
 0x3a3   : > { %2256 = vrcp.f32 (%p2906_p12), %v3120_v53 }
 0x3ab   : > { %v2251_v33 = vpop.eup (%p2906_p12), %2250 }
 0x3ad   : > { %v2253_v34 = vpop.eup (%p2906_p12), %2252 }
 0x3cd   : >> { %v1114_v2 = vpop.f32.mrf.mxu0 }
 0x3ce   : >> { %v2900_v38 = vadd.f32 %v1114_v2, %v1041_v1   ;;  %v1574_v1 = vld [vmem:[%s3091_s6 + $0x10] sm:$0xff] (%p2906_p12)  ;;  %v1573_v2 = vld [vmem:[%s3091_s6 + $0x8] sm:$0xff] (%p2906_p12) }
 0x3cf   : >> { %v1971_v42 = vpop.f32.mrf.mxu0 }
 0x3d0   : >> { %v3121_v4 = vmov %v2900_v38  ;;  %v3130_v42 = vmov %v3120_v53 }
 0x3d1   : >> { %v1187_v41 = vpop.f32.mrf.mxu1  ;;  %v3126_v38 = vmov %v3121_v4  ;;  %v1883_v42 = vld [vmem:[%s3090_s5] ss:$0 sm:$0xff] (%p2906_p12) }
 0x3d2   : >> { %v1338_v6 = vadd.f32 %v1187_v41, %v1042_v5   ;;  %v3129_v41 = vmov %v1038_v58 }
 0x3d3   : >> { %v1260_v8 = vpop.f32.mrf.mxu0  ;;  %v1976_v40 = vpop.f32.mrf.mxu1 }
 0x3d4   : >> { %v1339_v11 = vadd.f32 %v1260_v8, %v1043_v7   ;;  %v3125_v37 = vmov %v1338_v6  ;;  %v3128_v40 = vmov %v1039_v61  ;;  %649 = sbr.rel (!%p2906_p12) target bundleno = 423 (0x1a7), region = 134  ;;  %v1578_v61 = vld [vmem:[%s3091_s6 + $0x30] sm:$0xff] (%p2906_p12) }
 0x3d5   : >> { %v1981_v39 = vpop.f32.mrf.mxu0  ;;  %v1333_v13 = vpop.f32.mrf.mxu1  ;;  %2012 = vmatpush3.msra.mxu0 (%p2906_p12), %v1578_v61 }
 0x3d6   : >> { %v1340_v14 = vadd.f32 %v1333_v13, %v1044_v12   ;;  %v3124_v36 = vmov %v1339_v11  ;;  %v3127_v39 = vmov %v1040_v0  ;;  %v1347_v37 = vmul.f32 (%p2906_p12), %v2253_v34, %v1339_v11  ;;  %2013 = vmatprep.subr.mxu0 (%p2906_p12), %v2508_v17  ;;  %v1575_v0 = vld [vmem:[%s3091_s6 + $0x18] sm:$0xff] (%p2906_p12) }
 0x3d7   : >> { %v1986_v15 = vpop.f32.mrf.mxu1  ;;  %v2255_v36 = vpop.eup (%p2906_p12), %2254  ;;  %2014 = vmatpush3.msra.mxu0 (%p2906_p12), %v1577_v62  ;;  %v1885_v39 = vld [vmem:[%s3092_s7] ss:$0 sm:$0xff] (%p2906_p12) }
 0x3d8   : >> { %v3123_v35 = vmov %v1340_v14  ;;  %v1348_v38 = vmul.f32 (%p2906_p12), %v2255_v36, %v1340_v14  ;;  %v2257_v9 = vpop.eup (%p2906_p12), %2256  ;;  %2015 = vmatprep.subr.mxu0 (%p2906_p12), %v2508_v17 }
 0x3d9   : > { %v1346_v35 = vmul.f32 %v2251_v33, %v1338_v6  ;;  %v1345_v18 = vmul.f32 %v2257_v9, %v3121_v4  ;;  %2016 = vmatpush3.msra.mxu0 %v1576_v63  ;;  %v1572_v4 = vld [vmem:[%s3091_s6] sm:$0xff] }
 0x3da   : > { %1358 = vrot.lane.b32.xlu1 %v1348_v38, %s2511_s13  ;;  %2017 = vmatprep.subr.mxu0 %v2508_v17  ;;  %v1887_v9 = vld [vmem:[%s3095_s10] ss:$0 sm:$0xff] }
 0x3db   : > { %1350 = vrot.lane.b32.xlu0 %v1346_v35, %s2510_s15  ;;  %2018 = vmatpush3.msra.mxu0 %v1575_v0  ;;  %s1704_s15 = sadd.s32 %s2422_s24, %s1890_s18  ;;  %s3136_s24 = smov %s3135_s14 }
 0x3dc   : > { %2019 = vmatprep.subr.mxu0 %v2508_v17  ;;  %s1891_s20 = sshll.u32 %s1704_s15, 7  ;;  %s3137_s18 = sand.u32 1, %s2414_s22  }
 0x3dd   : > { %2020 = vmatpush3.msra.mxu0 %v1574_v1  ;;  %s1706_s25 = scalar_lea.hbm %s3097_s12, %s1891_s20  ;;  %s1693_s13 = scalar_lea.sflag [#allocation5], %s3137_s18 }
 0x3de   : > { %2021 = vmatprep.subr.mxu0 %v2508_v17  ;;  %s2513_s15 = smov [#allocation6]  }
 0x3df   : > { %1354 = vrot.lane.b32.xlu0 %v1347_v37, %s2512_s4  ;;  %2022 = vmatpush3.msra.mxu0 %v1573_v2  ;;  %s2290_s4 = scalar_lea.vmem %s1709_s26, 128  ;;  %s2294_s29 = sshll.u32 %s2513_s15, 4  ;;  %s2295_s29 = int_to_ptr.vmem [resolvable:$false] %s2294_s29 }
 0x3e0   : > { %2023 = vmatprep.subr.mxu0 %v2508_v17  ;;  %p2291_p0 = scmp.ne.s32.totalorder %s1709_s26, %s2290_s4  ;;  %s2296_s21 = scalar_lea.vmem %s2295_s29, 256 }
 0x3e1   : > { %2024 = vmatpush3.msra.mxu0 %v1572_v4  ;;  %p2297_p4 = scmp.lt.s32.totalorder %s1709_s26, %s2295_s29  ;;  %p2298_p5 = scmp.lt.s32.totalorder %s2296_s21, %s2290_s4 }
 0x3e2   : > { %p2292_p1 = pnand %p2291_p0, %p2631_p3 }
 0x3e3   : > { %p2299_p6 = por %p2298_p5, %p2297_p4 }
 0x3e4   : > { %p2293_p2 = pneg %p2292_p1 }
 0x3e6   : > { %p2300_p7 = pnand %p2299_p6, %p2293_p2 }
 0x44c   : > { %v1359_v19 = vpop.permute.xlu1 %1358 }
 0x44d   : > { %v1351_v10 = vpop.permute.xlu0 %1350 }
 0x44e   : > { %v1362_v20 = vsel %vm676_vm3, %v1345_v18, %v1351_v10  ;;  %v1888_v18 = vld [vmem:[%s3096_s11] ss:$0 sm:$0xff] }
 0x451   : > { %v1355_v21 = vpop.permute.xlu0 %1354 }
 0x452   : > { %v1364_v22 = vsel %vm1363_vm5, %v1362_v20, %v1355_v21 }
 0x453   : > { %v1366_v23 = vsel %vm1365_vm6, %v1364_v22, %v1359_v19 }
 0x454   : > { %1996 = vmatmul.mubr.msk.f32.vlgmr.msra.gmra.mxu1 %vm1378_vm7, %v1366_v23 }
 0x455   : > { %2006 = vmatprep.mubr.msk.f32.mxu1 %vm2509_vm4, %v2508_v17  ;;  %1999 = vmatpush3.msra.mxu1 %v1486_v49 }
 0x456   : > { %2000 = vmatprep.subr.mxu1 %v2508_v17 }
 0x457   : > { %2001 = vmatpush3.msra.mxu1 %v1485_v50 }
 0x458   : > { %2002 = vmatprep.subr.mxu1 %v2508_v17 }
 0x459   : > { %2003 = vmatpush3.msra.mxu1 %v1484_v51 }
 0x45a   : > { %2004 = vmatprep.subr.mxu1 %v2508_v17 }
 0x514   : > { %v1448_v25 = vpop.f32.mrf.mxu1 }
 0x515   : > { %v1449_v26 = vadd.f32 %v1879_v24, %v1448_v25 }
 0x516   : > { %v1997_v27 = vpop.f32.mrf.mxu1 }
 0x517   : > { %v1452_v28 = vadd.f32 %v1449_v26, %v2735_v30  ;;  %v1483_v30 = vld [vmem:[#allocation3] sm:$0xff] }
 0x518   : > { %2005 = vmatpush3.msra.mxu1 %v1483_v30 }
 0x519   : > { %v1453_v29 = vsel %vm1378_vm7, %v1452_v28, 0.0 }
 0x51a   : > { %1454 = vadd.xlane.f32.xlu1 %v1453_v29 }
 0x5a3   : > { %v1455_v43 = vpop.xlane.xlu1 %1454 }
 0x5a4   : > { %v1457_v44 = vmul.f32 0.03125, %v1455_v43 }
 0x5a6   : > { %v1458_v45 = vsub.f32 %v1452_v28, %v1457_v44 }
 0x5a8   : > { %v1459_v46 = vmul.f32 %v1458_v45, %v1458_v45 }
 0x5aa   : > { %v1460_v48 = vsel %vm1378_vm7, %v1459_v46, 0.0 }
 0x5ab   : > { %1461 = vadd.xlane.f32.xlu0 %v1460_v48 }
 0x634   : > { %v1462_v52 = vpop.xlane.xlu0 %1461 }
 0x635   : > { %v1463_v47 = vmul.f32 0.03125, %v1462_v52 }
 0x637   : > { %v1464_v53 = vadd.f32 1e-05, %v1463_v47 }
 0x639   : > { %2258 = vrsqrt.f32 %v1464_v53 }
 0x646   : > { %v2259_v54 = vpop.eup %2258 }
 0x647   : > { %v1466_v56 = vmul.f32 %v2259_v54, %v1458_v45 }
 0x649   : > { %v1474_v58 = vmul.f32 %v1881_v55, %v1466_v56 }
 0x64b   : > { %v1482_v59 = vadd.f32 %v1882_v57, %v1474_v58 }
 0x64d   : > { %2007 = vmatmul.mubr.msk.f32.vlgmr.msra.gmra.mxu1 %vm1378_vm7, %v1482_v59 }
 0x70d   : > { %v1563_v5 = vpop.f32.mrf.mxu1 }
 0x70e   : > { %v1564_v41 = vadd.f32 %v1883_v42, %v1563_v5 }
 0x70f   : > { %v2008_v6 = vpop.f32.mrf.mxu1 }
 0x710   : > { %v1568_v7 = vmul.f32 0.70710677, %v1564_v41  ;;  %v1567_v40 = vmul.f32 0.5, %v1564_v41 }
 0x712   : > { %2260 = verf.f32 %v1568_v7 }
 0x71f   : > { %v2261_v8 = vpop.eup %2260 }
 0x720   : > { %v1570_v11 = vadd.f32 1.0, %v2261_v8 }
 0x722   : > { %v1571_v12 = vmul.f32 %v1570_v11, %v1567_v40 }
 0x724   : > { %2026 = vmatmul.mubr.msk.f32.vlgmr.msra.gmra.mxu0 %vm1587_vm8, %v1571_v12 }
 0x7e4   : > { %v1657_v13 = vpop.f32.mrf.mxu0 }
 0x7e5   : > { %v1658_v14 = vadd.f32 %v1885_v39, %v1657_v13 }
 0x7e6   : > { %v2027_v15 = vpop.f32.mrf.mxu0 }
 0x7e7   : > { %v1661_v16 = vadd.f32 %v1658_v14, %v1482_v59 }
 0x7e9   : > { %v1662_v17 = vsel %vm1378_vm7, %v1661_v16, 0.0 }
 0x7ea   : > { %1663 = vadd.xlane.f32.xlu0 %v1662_v17 }
 0x873   : > { %v1664_v3 = vpop.xlane.xlu0 %1663 }
 0x874   : > { %v1665_v31 = vmul.f32 0.03125, %v1664_v3 }
 0x876   : > { %v1666_v32 = vsub.f32 %v1661_v16, %v1665_v31 }
 0x878   : > { %v1667_v33 = vmul.f32 %v1666_v32, %v1666_v32 }
 0x87a   : > { %v1668_v34 = vsel %vm1378_vm7, %v1667_v33, 0.0 }
 0x87b   : > { %1669 = vadd.xlane.f32.xlu1 %v1668_v34 }
 0x904   : > { %v1670_v35 = vpop.xlane.xlu1 %1669 }
 0x905   : > { %v1671_v36 = vmul.f32 0.03125, %v1670_v35 }
 0x907   : > { %v1672_v37 = vadd.f32 1e-05, %v1671_v36 }
 0x909   : > { %2262 = vrsqrt.f32 %v1672_v37 }
 0x916   : > { %v2263_v38 = vpop.eup %2262 }
 0x917   : > { %v1674_v10 = vmul.f32 %v2263_v38, %v1666_v32 }
 0x919   : > { %v1682_v19 = vmul.f32 %v1887_v9, %v1674_v10 }
 0x91b   : > { %v1690_v20 = vadd.f32 %v1888_v18, %v1682_v19 }
 0x91d   : > { %1691 = vst.msk [vmem:[%s3136_s24] sm:$0xff] %vm1378_vm7, %v1690_v20 }
 0x91e   : > { %2303 = shalt.err (!%p2300_p7)
}
 0x91f   : > { %s2304_s0 = scalar_lea.hbm %s1706_s25, 128  ;;  %s2308_s14 = scalar_lea.hbm %s3097_s12, 512 }
 0x920   : > { %p2305_p9 = scmp.ne.s32.totalorder %s1706_s25, %s2304_s0  ;;  %p2309_p10 = scmp.lt.s32.totalorder %s1706_s25, %s3097_s12 }
 0x921   : > { %p2310_p12 = scmp.lt.s32.totalorder %s2308_s14, %s2304_s0 }
 0x922   : > { %p2306_p11 = pnand %p2305_p9, %p2631_p3 }
 0x923   : > { %p2311_p0 = por %p2310_p12, %p2309_p10 }
 0x924   : > { %p2307_p13 = pneg %p2306_p11 }
 0x926   : > { %p2312_p1 = pnand %p2311_p0, %p2307_p13 }
 0x928   : > { %2315 = shalt.err (!%p2312_p1)
}
 0x929   : > { %2032 = dma.vmem_to_hbm [thread:$0]  (%p2631_p3), %s1709_s26, 128, %s1706_s25, %s1693_s13  }
 0x92a PF: > { %s3138_s18 = sld [smem:[#allocation9_spill]]  ;;  %p2044_p2 = scmp.ge.s32.totalorder %s2438_s28, 2 }
 0x92c   : > { %p2039_p4 = pnand %p2044_p2, %p2640_p8 }
 0x92e   : > { %p2040_p5 = pneg %p2039_p4 }
 0x930   : > { %s1720_s15 = sand.u32 1, %s3138_s18  }
 0x931   : > { %s1721_s29 = scalar_lea.sflag [#allocation5], %s1720_s15 }
 0x932   : > { %2405 = dma.done.wait (%p2040_p5), %s1721_s29, 128  }
 0x933   : > { %2407 = vsyncadd (%p2040_p5), %s1721_s29, 4294967168  ;;  %s26_s28 = sadd.s32 1, %s2438_s28   ;;  %s3140_s24 = sld [smem:[#allocation10_spill]] }
 0x934   : > { %p23_p6 = scmp.ge.s32.totalorder %s26_s28, 6   ;;  %s3141_s26 = sld [smem:[#allocation11_spill]] }
 0x935   : > { %s3142_s17 = sld [smem:[#allocation12_spill]]  ;;  %s3143_s21 = smov %s2414_s22 }
 0x936   : > { %s3144_s22 = smov %s2418_s23  ;;  %s3145_s23 = smov %s2658_s30 }
 0x937   : > { %s3146_s25 = smov %s2434_s27  ;;  %25 = sbr.rel (!%p23_p6) target bundleno = 9 (0x9), region = 145 }
 0x93b   : > { %s3147_s27 = smov %s3142_s17 }
 0x93c   :  { %1726 = vsyncpa [#allocation4], 1 }
 0x93d   :  { %1728 = vsyncpa [#allocation4 + $0x1], 1 }
 0x93e   :  { %1729 = vsyncpa [#allocation5], 1 }
 0x93f   :  { %1731 = vsyncpa [#allocation5 + $0x1], 1 }

// kernel: tpu_custom_call.1
= control target key start
LH: loop header
LB: loop body
LE: loop exit
PB: predicated region body
PF: predicated region fallthrough
CT: control target
= control target key end

     0   :  { %s3085_s0 = inlined_call_operand.vmem [shape: f32[2,16,32], index: 0, kind: input, shape index: {}]   ;;  %s3086_s1 = inlined_call_operand.vmem [shape: f32[32,96], index: 1, kind: input, shape index: {}]   ;;  %s3087_s2 = inlined_call_operand.vmem [shape: f32[32,32], index: 2, kind: input, shape index: {}]   ;;  %s3088_s3 = inlined_call_operand.vmem [shape: f32[1,32], index: 3, kind: input, shape index: {}]   ;;  %s3089_s4 = inlined_call_operand.hbm [shape: f32[32,64], index: 4, kind: input, shape index: {}]   ;;  %s3090_s5 = inlined_call_operand.vmem [shape: f32[1,64], index: 5, kind: input, shape index: {}]   ;;  %s3091_s6 = inlined_call_operand.vmem [shape: f32[64,32], index: 6, kind: input, shape index: {}]   ;;  %s3092_s7 = inlined_call_operand.vmem [shape: f32[1,32], index: 7, kind: input, shape index: {}]   ;;  %s3093_s8 = inlined_call_operand.vmem [shape: f32[1,32], index: 8, kind: input, shape index: {}]   ;;  %s3094_s9 = inlined_call_operand.vmem [shape: f32[1,32], index: 9, kind: input, shape index: {}]   ;;  %s3095_s10 = inlined_call_operand.vmem [shape: f32[1,32], index: 10, kind: input, shape index: {}]   ;;  %s3096_s11 = inlined_call_operand.vmem [shape: f32[1,32], index: 11, kind: input, shape index: {}]   ;;  %s3097_s12 = inlined_call_operand.hbm [shape: f32[2,16,32], index: 12, kind: output, shape index: {}]  }
   0x1   :  { %3105 = sst [smem:[#allocation14_spill]] %s3085_s0 }
   0x2   :  { %3106 = sst [smem:[#allocation15_spill]] %s3089_s4 }
   0x3   :  { %17 = vsyncpa [#allocation4], 0 }
   0x4   :  { %18 = vsyncpa [#allocation5], 0 }
   0x5   :  { %20 = vsyncpa [#allocation5 + $0x1], 0  ;;  %s2579_s21 = smov 0   ;;  %s2581_s22 = smov 0  }
   0x6   :  { %s2583_s23 = smov 0   ;;  %s2585_s24 = smov 0  }
   0x7   :  { %s2587_s25 = smov 0   ;;  %s2589_s26 = smov 0  }
   0x8   :  { %s2591_s27 = smov 0   ;;  %s2593_s28 = smov 0  }
   0x9 LB: > { %3107 = sst [smem:[#allocation9_spill]] %s2410_s21  ;;  %s1843_s29 = sadd.s32 4294967295, %s2438_s28   ;;  %s2438_s28 = sphi %s2593_s28, %s26_s28   ;;  %s2434_s27 = sphi %s2591_s27, %s3147_s27   ;;  %s2430_s26 = sphi %s2589_s26, %s3141_s26   ;;  %s2426_s25 = sphi %s2587_s25, %s3146_s25   ;;  %s2422_s24 = sphi %s2585_s24, %s3140_s24   ;;  %s2418_s23 = sphi %s2583_s23, %s3145_s23   ;;  %s2414_s22 = sphi %s2581_s22, %s3144_s22   ;;  %s2410_s21 = sphi %s2579_s21, %s3143_s21  }
   0xa   : > { %3108 = sst [smem:[#allocation10_spill]] %s2430_s26  ;;  %s1844_s30 = sadd.s32 4294967294, %s2438_s28  }
   0xb   : > { %s35_s13 = sadd.s32 1, %s2430_s26  ;;  %s38_s14 = sadd.s32 1, %s2434_s27 }
   0xc   : > { %p36_p0 = scmp.ge.s32.totalorder %s35_s13, 2  ;;  %s304_s15 = sadd.s32 1, %s2418_s23 }
   0xd   : > { %p314_p1 = scmp.ne.s32.totalorder %s2418_s23, %s2414_s22  ;;  %p315_p2 = scmp.eq.s32.totalorder %s1843_s29, 3 }
   0xe   : > { %s3149_s13 = smov (%p36_p0, %s35_s13), 0  ;;  %s3151_s14 = smov (!%p36_p0, %s38_s14), %s2434_s27 }
   0xf   : > { %3109 = sst [smem:[#allocation11_spill]] %s3149_s13  ;;  %s300_s16 = ssub.s32 %s2430_s26, %s3149_s13 }
  0x10   : > { %p2631_p3 = por %p315_p2, %p314_p1  ;;  %p40_p4 = scmp.ge.s32.totalorder %s3151_s14, 2 }
  0x11   : > { %p320_p5 = scmp.ne.s32.totalorder %s2414_s22, %s2410_s21  ;;  %p321_p6 = scmp.eq.s32.totalorder %s1844_s30, 3 }
  0x12   : > { %p1845_p7 = scmp.ge.s32.totalorder %s2438_s28, 1  ;;  %s3153_s14 = smov (%p40_p4, %s3151_s14), 0 }
  0x13   : > { %3111 = sst [smem:[#allocation12_spill]] %s3153_s14  ;;  %p2640_p8 = por %p321_p6, %p320_p5 }
  0x14   : > { %p328_p9 = scmp.lt.s32.totalorder %s2438_s28, 5  ;;  %s299_s19 = ssub.s32 %s2434_s27, %s3153_s14 }
  0x15   : > { %s3112_s18 = scalar_select %p2640_p8, 1, 0 }
  0x16   : > { %s301_s20 = sor.u32 %s300_s16, %s299_s19  ;;  %p2647_p10 = pnand %p1845_p7, %p328_p9 }
  0x17   : > { %3113 = sst [smem:[#allocation13_spill]] %s3112_s18  ;;  %p302_p11 = scmp.eq.s32.totalorder %s301_s20, 0 }
  0x18   : > { %p2651_p12 = scmp.eq.s32.totalorder %s1843_s29, 0  ;;  %p2034_p13 = pneg %p2647_p10 }
  0x19   : > { %s2658_s30 = scalar_select %p302_p11, %s2418_s23, %s304_s15  }
  0x1a   : > { %s2492_s21 = smov [#allocation3]   ;;  %p2662_p0 = pnand %p2651_p12, %p2034_p13 }
  0x1b   : > { %s349_s18 = sshll.u32 %s2492_s21, 4  ;;  %s350_s18 = int_to_ptr.vmem [resolvable:$true] %s349_s18 }
  0x1c   : > { %p2266_p1 = pneg %p2662_p0  ;;  %s2275_s29 = scalar_lea.vmem %s350_s18, 512 }
  0x1d   : > { %p2276_p2 = scmp.ne.s32.totalorder %s350_s18, %s2275_s29  ;;  %p2283_p6 = scmp.lt.s32.totalorder %s350_s18, %s350_s18 }
  0x1e   : > { %p2284_p7 = scmp.lt.s32.totalorder %s2275_s29, %s2275_s29 }
  0x1f   : > { %p2278_p4 = pnand %p2276_p2, %p2266_p1 }
  0x20   : > { %p2285_p9 = por %p2284_p7, %p2283_p6 }
  0x21   : > { %p2279_p5 = pneg %p2278_p4 }
  0x23   : > { %p2286_p11 = pnand %p2285_p9, %p2279_p5 }
  0x25   : > { %2289 = shalt.err (!%p2286_p11)
}
  0x26   : > { %s2493_s15 = smov 128   ;;  %s2494_s21 = smov 8  }
  0x27   : > { %s3117_s4 = sld [smem:[#allocation15_spill]] }
  0x29   : > { %394 = sbr.rel (%p2647_p10) target bundleno = 2346 (0x92a), region = 68 }
  0x2d   : > { %2037 = dma.hbm_to_vmem [thread:$0]  (!%p2662_p0), %s3117_s4, 512, %s350_s18, [#allocation4], %s2493_s15, %s2493_s15, %s2494_s21  }
  0x2e   : > { %2401 = dma.done.wait (%p2651_p12), [#allocation4], 512  }
  0x2f   : > { %2403 = vsyncadd (%p2651_p12), [#allocation4], 4294966784  ;;  %s3102_s29 = sand.u32 1, %s2414_s22   ;;  %p436_p13 = scmp.lt.s32.totalorder %s2426_s25, 1 }
  0x30   : > { %s2683_s16 = sshll.u32 %s3102_s29, 3  ;;  %s3118_s0 = sld [smem:[#allocation14_spill]] }
  0x31   : > { %s437_s18 = scalar_select %p436_p13, %s2426_s25, 1 }
  0x32   : > { %p1853_p10 = scmp.ne.s32.totalorder %s2422_s24, 0 }
  0x33   : > { %s1894_s15 = sshll.u32 %s437_s18, 4  ;;  %s3104_s14 = smov (!%p1853_p10), 112  }
  0x34   : > { %444 = sbr.rel (%p1853_p10) target bundleno = 415 (0x19f), region = 76  ;;  %s2496_s29 = smov (!%p1853_p10), 120  }
  0x35   : > { %s2497_s21 = smov (!%p1853_p10), 104   ;;  %s2498_s26 = smov (!%p1853_p10), 96  }
  0x36   : > { %s2689_s19 = scalar_lea.vmem %s3118_s0, %s1894_s15  ;;  %s2499_s18 = smov (!%p1853_p10), 88  }
  0x37   : > { %s2500_s15 = smov (!%p1853_p10), 80   ;;  %s2501_s13 = smov (!%p1853_p10), 72  }
  0x38   : > { %s2502_s4 = smov (!%p1853_p10), 64   ;;  %s2503_s20 = smov (!%p1853_p10), 56  }
  0x39   : > { %v450_v0 = vld [vmem:[%s3086_s1 + $0x18] sm:$0xff]  ;;  %v449_v1 = vld [vmem:[%s3086_s1 + $0x10] sm:$0xff]  ;;  %vm451_vm0 = vcmask 261120   ;;  %v445_v2 = vld [vmem:[%s2689_s19] sm:$0xff]  ;;  %vm533_vm1 = vcmask 64512  }
  0x3a   : > { %1936 = vmatprep.subr.mxu0 %v450_v0  ;;  %v448_v3 = vld [vmem:[%s3086_s1 + $0x8] sm:$0xff]  ;;  %1944 = vmatprep.mubr.msk.f32.mxu0 %vm451_vm0, %v445_v2  ;;  %v447_v4 = vld [vmem:[%s3086_s1] sm:$0xff] }
  0x3b   : > { %1937 = vmatpush3.msra.mxu0 %v450_v0  ;;  %v446_v5 = vld [vmem:[%s2689_s19 + $0x8] sm:$0xff] }
  0x3c   : > { %1938 = vmatprep.subr.mxu0 %v449_v1 }
  0x3d   : > { %1939 = vmatpush3.msra.mxu0 %v449_v1 }
  0x3e   : > { %1940 = vmatprep.subr.mxu0 %v448_v3 }
  0x3f   : > { %1941 = vmatpush3.msra.mxu0 %v448_v3 }
  0x40   : > { %1942 = vmatprep.subr.mxu0 %v447_v4 }
  0x41   : > { %1943 = vmatpush3.msra.mxu0 %v447_v4 }
  0x42   : > { %1945 = vmatmul.mubr.msk.f32.vlgmr.msra.gmra.mxu0 %vm451_vm0, %v446_v5 }
 0x102   : > { %v1946_v6 = vpop.f32.mrf.mxu0 }
 0x103   : > { %535 = vst.msk [vmem:[#allocation2 + $0x8] sm:$0xff] %vm533_vm1, %v1946_v6  ;;  %549 = vrot.lane.b32.xlu1 %v1946_v6, %s3104_s14  ;;  %540 = vrot.lane.b32.xlu0 %v1946_v6, %s2496_s29  ;;  %s2504_s14 = smov 48  }
 0x104   : > { %v524_v7 = vpop.f32.mrf.mxu0 }
 0x105   : > { %534 = vst.msk [vmem:[#allocation2] sm:$0xff] %vm533_vm1, %v524_v7 }
 0x107   : > { %558 = vrot.lane.b32.xlu1 %v1946_v6, %s2497_s21  ;;  %538 = vrot.lane.b32.xlu0 %v524_v7, %s2496_s29  ;;  %s3119_s29 = smov 112  }
 0x10b   : > { %567 = vrot.lane.b32.xlu1 %v1946_v6, %s2498_s26  ;;  %556 = vrot.lane.b32.xlu0 %v524_v7, %s2497_s21  ;;  %s2505_s21 = smov 40  }
 0x10f   : > { %576 = vrot.lane.b32.xlu1 %v1946_v6, %s2499_s18  ;;  %565 = vrot.lane.b32.xlu0 %v524_v7, %s2498_s26 }
 0x113   : > { %585 = vrot.lane.b32.xlu1 %v1946_v6, %s2500_s15  ;;  %574 = vrot.lane.b32.xlu0 %v524_v7, %s2499_s18 }
 0x117   : > { %594 = vrot.lane.b32.xlu1 %v1946_v6, %s2501_s13  ;;  %583 = vrot.lane.b32.xlu0 %v524_v7, %s2500_s15 }
 0x11b   : > { %603 = vrot.lane.b32.xlu1 %v1946_v6, %s2502_s4  ;;  %592 = vrot.lane.b32.xlu0 %v524_v7, %s2501_s13 }
 0x11f   : > { %612 = vrot.lane.b32.xlu1 %v1946_v6, %s2503_s20  ;;  %601 = vrot.lane.b32.xlu0 %v524_v7, %s2502_s4 }
 0x123   : > { %621 = vrot.lane.b32.xlu1 %v1946_v6, %s2504_s14  ;;  %610 = vrot.lane.b32.xlu0 %v524_v7, %s2503_s20 }
 0x127   : > { %547 = vrot.lane.b32.xlu1 %v524_v7, %s3119_s29  ;;  %619 = vrot.lane.b32.xlu0 %v524_v7, %s2504_s14 }
 0x12b   : > { %630 = vrot.lane.b32.xlu1 %v1946_v6, %s2505_s21  ;;  %628 = vrot.lane.b32.xlu0 %v524_v7, %s2505_s21 }
 0x175   : > { %v550_v8 = vpop.permute.xlu1 %549  ;;  %v541_v9 = vpop.permute.xlu0 %540 }
 0x176   : > { %555 = vst.msk [vmem:[#allocation2 + $0x28] sm:$0xff] %vm533_vm1, %v550_v8  ;;  %546 = vst.msk [vmem:[#allocation2 + $0x18] sm:$0xff] %vm533_vm1, %v541_v9 }
 0x179   : > { %v559_v10 = vpop.permute.xlu1 %558  ;;  %v539_v11 = vpop.permute.xlu0 %538 }
 0x17a   : > { %564 = vst.msk [vmem:[#allocation2 + $0x38] sm:$0xff] %vm533_vm1, %v559_v10  ;;  %545 = vst.msk [vmem:[#allocation2 + $0x10] sm:$0xff] %vm533_vm1, %v539_v11 }
 0x17d   : > { %v568_v12 = vpop.permute.xlu1 %567  ;;  %v557_v13 = vpop.permute.xlu0 %556 }
 0x17e   : > { %573 = vst.msk [vmem:[#allocation2 + $0x48] sm:$0xff] %vm533_vm1, %v568_v12  ;;  %563 = vst.msk [vmem:[#allocation2 + $0x30] sm:$0xff] %vm533_vm1, %v557_v13 }
 0x181   : > { %v577_v14 = vpop.permute.xlu1 %576  ;;  %v566_v15 = vpop.permute.xlu0 %565 }
 0x182   : > { %582 = vst.msk [vmem:[#allocation2 + $0x58] sm:$0xff] %vm533_vm1, %v577_v14  ;;  %572 = vst.msk [vmem:[#allocation2 + $0x40] sm:$0xff] %vm533_vm1, %v566_v15 }
 0x185   : > { %v586_v16 = vpop.permute.xlu1 %585  ;;  %v575_v17 = vpop.permute.xlu0 %574 }
 0x186   : > { %591 = vst.msk [vmem:[#allocation2 + $0x68] sm:$0xff] %vm533_vm1, %v586_v16  ;;  %581 = vst.msk [vmem:[#allocation2 + $0x50] sm:$0xff] %vm533_vm1, %v575_v17 }
 0x189   : > { %v595_v18 = vpop.permute.xlu1 %594  ;;  %v584_v19 = vpop.permute.xlu0 %583 }
 0x18a   : > { %600 = vst.msk [vmem:[#allocation2 + $0x78] sm:$0xff] %vm533_vm1, %v595_v18  ;;  %590 = vst.msk [vmem:[#allocation2 + $0x60] sm:$0xff] %vm533_vm1, %v584_v19 }
 0x18d   : > { %v604_v20 = vpop.permute.xlu1 %603  ;;  %v593_v21 = vpop.permute.xlu0 %592 }
 0x18e   : > { %609 = vst.msk [vmem:[#allocation2 + $0x88] sm:$0xff] %vm533_vm1, %v604_v20  ;;  %599 = vst.msk [vmem:[#allocation2 + $0x70] sm:$0xff] %vm533_vm1, %v593_v21 }
 0x191   : > { %v613_v22 = vpop.permute.xlu1 %612  ;;  %v602_v23 = vpop.permute.xlu0 %601 }
 0x192   : > { %618 = vst.msk [vmem:[#allocation2 + $0x98] sm:$0xff] %vm533_vm1, %v613_v22  ;;  %608 = vst.msk [vmem:[#allocation2 + $0x80] sm:$0xff] %vm533_vm1, %v602_v23 }
 0x195   : > { %v622_v24 = vpop.permute.xlu1 %621  ;;  %v611_v25 = vpop.permute.xlu0 %610 }
 0x196   : > { %627 = vst.msk [vmem:[#allocation2 + $0xa8] sm:$0xff] %vm533_vm1, %v622_v24  ;;  %617 = vst.msk [vmem:[#allocation2 + $0x90] sm:$0xff] %vm533_vm1, %v611_v25 }
 0x199   : > { %v548_v26 = vpop.permute.xlu1 %547  ;;  %v620_v27 = vpop.permute.xlu0 %619 }
 0x19a   : > { %554 = vst.msk [vmem:[#allocation2 + $0x20] sm:$0xff] %vm533_vm1, %v548_v26  ;;  %626 = vst.msk [vmem:[#allocation2 + $0xa0] sm:$0xff] %vm533_vm1, %v620_v27 }
 0x19d   : > { %v631_v28 = vpop.permute.xlu1 %630  ;;  %v629_v29 = vpop.permute.xlu0 %628 }
 0x19e   : > { %636 = vst.msk [vmem:[#allocation2 + $0xb8] sm:$0xff] %vm533_vm1, %v631_v28  ;;  %635 = vst.msk [vmem:[#allocation2 + $0xb0] sm:$0xff] %vm533_vm1, %v629_v29 }
 0x19f PF: > { %s1856_s20 = sshll.u32 %s2422_s24, 3  ;;  %v2745_v35 = vmov 0.0   ;;  %v2747_v36 = vmov 0.0   ;;  %v2749_v37 = vmov 0.0   ;;  %v2751_v38 = vmov 0.0  }
 0x1a0   : > { %s638_s14 = scalar_lea.vmem %s2689_s19, %s1856_s20  ;;  %s640_s26 = scalar_lea.vmem [#allocation2], %s1856_s20  ;;  %v2753_v39 = vmov 0.0   ;;  %v2755_v40 = vmov 0.0   ;;  %v2757_v41 = vmov 0.0   ;;  %v2759_v42 = vmov 0.0  }
 0x1a1   : > { %v2735_v30 = vld [vmem:[%s638_s14] sm:$0xff]  ;;  %v2761_v43 = vmov -inf   ;;  %v2763_v44 = vmov -inf   ;;  %v2765_v45 = vmov -inf   ;;  %v2767_v46 = vmov -inf   ;;  %s2769_s19 = smov 0  }
 0x1a5   : > { %v2737_v31 = vld [vmem:[%s640_s26] sm:$0xff]  ;;  %v2739_v32 = vld [vmem:[%s640_s26 + $0x10] sm:$0xff] }
 0x1a6   : > { %v2741_v33 = vld [vmem:[%s640_s26 + $0x20] sm:$0xff]  ;;  %v2743_v34 = vld [vmem:[%s640_s26 + $0x30] sm:$0xff] }
 0x1a7 LB: >> { %v2506_v47 = vmov 0.0   ;;  %vm2507_vm2 = vmmov 0   ;;  %s1857_s18 = sshll.u32 %s2490_s19, 3  ;;  %vm676_vm3 = vcmask 64512   ;;  %s650_s19 = sadd.s32 1, %s2490_s19   ;;  %s2490_s19 = sphi %s2769_s19, %s650_s19   ;;  %v2486_v46 = vphi %v2767_v46, %v3134_v46   ;;  %v2482_v45 = vphi %v2765_v45, %v3133_v45   ;;  %v2478_v44 = vphi %v2763_v44, %v3132_v44   ;;  %v2474_v43 = vphi %v2761_v43, %v3131_v43   ;;  %v2470_v42 = vphi %v2759_v42, %v3130_v42   ;;  %v2466_v41 = vphi %v2757_v41, %v3129_v41   ;;  %v2462_v40 = vphi %v2755_v40, %v3128_v40   ;;  %v2458_v39 = vphi %v2753_v39, %v3127_v39   ;;  %v2454_v38 = vphi %v2751_v38, %v3126_v38   ;;  %v2450_v37 = vphi %v2749_v37, %v3125_v37   ;;  %v2446_v36 = vphi %v2747_v36, %v3124_v36   ;;  %v2442_v35 = vphi %v2745_v35, %v3123_v35  }
 0x1a8   : >> { %1947 = vmatprep.subr.mxu0 %v2506_v47  ;;  %1949 = vmatprep.mubr.msk.f32.mxu0 %vm2507_vm2, %v2506_v47  ;;  %s2817_s15 = scalar_lea.vmem [#allocation2], %s1857_s18  ;;  %p2906_p12 = scmp.ge.s32.totalorder %s650_s19, 2  }
 0x1a9   : >> { %1952 = vmatprep.subr.mxu1 %v2506_v47  ;;  %1954 = vmatprep.mubr.msk.f32.mxu1 %vm2507_vm2, %v2506_v47  ;;  %v1858_v48 = vld [vmem:[%s2817_s15 + $0x40] sm:$0xff]  ;;  %v1859_v49 = vld [vmem:[%s2817_s15 + $0x50] sm:$0xff]  ;;  %vm2509_vm4 = vmmov (%p2906_p12), 0   ;;  %s2511_s13 = smov (%p2906_p12), 24   ;;  %s2512_s4 = smov (%p2906_p12), 16   ;;  %vm1363_vm5 = vcmask (%p2906_p12), 130048  }
 0x1aa   : >> { %1948 = vmatpush3.xpose.msk.msra.mxu0 %vm676_vm3, %v1858_v48  ;;  %1953 = vmatpush3.xpose.msk.msra.mxu1 %vm676_vm3, %v1859_v49  ;;  %v1860_v50 = vld [vmem:[%s2817_s15 + $0x60] sm:$0xff]  ;;  %v1861_v51 = vld [vmem:[%s2817_s15 + $0x70] sm:$0xff]  ;;  %vm1365_vm6 = vcmask (%p2906_p12), 195584   ;;  %vm1378_vm7 = vcmask (%p2906_p12), 261120   ;;  %vm1587_vm8 = vcmask (%p2906_p12), 523264   ;;  %s1890_s18 = sshll.u32 (%p2906_p12), %s2426_s25, 1 }
 0x1ab   : >> { %1957 = vmatprep.subr.mxu0 %v2506_v47  ;;  %1962 = vmatprep.subr.mxu1 %v2506_v47  ;;  %v1863_v0 = vld [vmem:[%s2817_s15 + $0x80] sm:$0xff]  ;;  %v1864_v1 = vld [vmem:[%s2817_s15 + $0x90] sm:$0xff]  ;;  %s3135_s14 = scalar_lea.vmem (%p2906_p12), [#allocation6], %s2683_s16 }
 0x1ac   : >> { %v1865_v22 = vld [vmem:[%s2817_s15 + $0xa0] sm:$0xff]  ;;  %v1866_v25 = vld [vmem:[%s2817_s15 + $0xb0] sm:$0xff]  ;;  %s2510_s15 = smov (%p2906_p12), 8   ;;  %s1708_s26 = sshll.u32 (%p2906_p12), %s3135_s14, 4  ;;  %s1709_s26 = int_to_ptr.vmem [resolvable:$true] %s1708_s26 }
 0x1ad   : >> { %1950 = vmatmul.mubr.msk.f32.vlgmr.msra.gmra.mxu0 %vm676_vm3, %v2737_v31  ;;  %1955 = vmatmul.mubr.msk.f32.vlgmr.msra.gmra.mxu1 %vm676_vm3, %v2739_v32  ;;  %v1368_v31 = vld [vmem:[%s3087_s2 + $0x8] sm:$0xff] (%p2906_p12)  ;;  %v1367_v32 = vld [vmem:[%s3087_s2] sm:$0xff] (%p2906_p12) }
 0x1ae   : >> { %1958 = vmatpush3.xpose.msk.msra.mxu0 %vm676_vm3, %v1860_v50  ;;  %1959 = vmatprep.mubr.msk.f32.mxu0 %vm2507_vm2, %v2506_v47 }
 0x1af   : >> { %1963 = vmatpush3.xpose.msk.msra.mxu1 %vm676_vm3, %v1861_v51  ;;  %1964 = vmatprep.mubr.msk.f32.mxu1 %vm2507_vm2, %v2506_v47 }
 0x1b0   : >> { %1967 = vmatprep.subr.mxu0 %v2506_v47  ;;  %1972 = vmatprep.subr.mxu1 %v2506_v47 }
 0x1b1   : >> { %1960 = vmatmul.mubr.msk.f32.vlgmr.msra.gmra.mxu0 %vm676_vm3, %v2741_v33 }
 0x1b2   : >> { %1965 = vmatmul.mubr.msk.f32.vlgmr.msra.gmra.mxu1 %vm676_vm3, %v2743_v34  ;;  %1969 = vmatprep.mubr.msk.f32.mxu0 %vm2507_vm2, %v2506_v47 }
 0x1b3   : >> { %1974 = vmatprep.mubr.msk.f32.mxu1 %vm2507_vm2, %v2506_v47  ;;  %1968 = vmatpush3.msra.mxu0 %v1863_v0 }
 0x1b4   : >> { %1977 = vmatprep.subr.mxu0 %v2506_v47  ;;  %1973 = vmatpush3.msra.mxu1 %v1864_v1 }
 0x1b5   : >> { %1982 = vmatprep.subr.mxu1 %v2506_v47 }
 0x26d   : >> { %v749_v52 = vpop.f32.mrf.mxu0  ;;  %v825_v53 = vpop.f32.mrf.mxu1 }
 0x26e   : >> { %v981_v54 = vsel %vm676_vm3, %v749_v52, -inf  ;;  %v984_v57 = vsel %vm676_vm3, %v825_v53, -inf }
 0x26f   : >> { %982 = vmax.xlane.f32.xlu0 %v981_v54  ;;  %v1951_v55 = vpop.f32.mrf.mxu0  ;;  %v1956_v56 = vpop.f32.mrf.mxu1 }
 0x271   : >> { %v901_v58 = vpop.f32.mrf.mxu0 }
 0x272   : >> { %v987_v59 = vsel %vm676_vm3, %v901_v58, -inf  ;;  %v977_v60 = vpop.f32.mrf.mxu1 }
 0x273   : >> { %985 = vmax.xlane.f32.xlu0 %v984_v57  ;;  %988 = vmax.xlane.f32.xlu1 %v987_v59  ;;  %v1961_v61 = vpop.f32.mrf.mxu0  ;;  %v990_v63 = vsel %vm676_vm3, %v977_v60, -inf }
 0x274   : >> { %v1966_v62 = vpop.f32.mrf.mxu1 }
 0x277   : >> { %991 = vmax.xlane.f32.xlu1 %v990_v63 }
 0x2f8   : >> { %v983_v2 = vpop.xlane.xlu0 %982 }
 0x2f9   : >> { %v2856_v3 = vmax.f32 %v2486_v46, %v983_v2  }
 0x2fb   : >> { %v997_v4 = vsub.f32 %v2486_v46, %v2856_v3  ;;  %v1009_v5 = vsub.f32 %v749_v52, %v2856_v3 }
 0x2fc   : >> { %v986_v6 = vpop.xlane.xlu0 %985  ;;  %v989_v7 = vpop.xlane.xlu1 %988 }
 0x2fd   : >> { %v1013_v8 = vmul.f32 1.442695, %v1009_v5  ;;  %v2862_v9 = vmax.f32 %v2482_v45, %v986_v6   ;;  %v2865_v10 = vmax.f32 %v2478_v44, %v989_v7  }
 0x2ff   : >> { %v998_v11 = vsub.f32 %v2482_v45, %v2862_v9  ;;  %v1010_v12 = vsub.f32 %v825_v53, %v2862_v9  ;;  %v999_v13 = vsub.f32 %v2478_v44, %v2865_v10  ;;  %2234 = vpow2.f32 %v1013_v8 }
 0x300   : >> { %v1011_v14 = vsub.f32 %v901_v58, %v2865_v10  ;;  %v992_v15 = vpop.xlane.xlu1 %991  ;;  %v1001_v45 = vmul.f32 1.442695, %v997_v4 }
 0x301   : >> { %v1015_v16 = vmul.f32 1.442695, %v1010_v12  ;;  %v2874_v17 = vmax.f32 %v2474_v43, %v992_v15   ;;  %v1003_v46 = vmul.f32 1.442695, %v998_v11  ;;  %v1005_v48 = vmul.f32 1.442695, %v999_v13 }
 0x302   : >> { %v1017_v18 = vmul.f32 1.442695, %v1011_v14 }
 0x303   : >> { %v1000_v19 = vsub.f32 %v2474_v43, %v2874_v17  ;;  %v1012_v20 = vsub.f32 %v977_v60, %v2874_v17  ;;  %2236 = vpow2.f32 %v1015_v16  ;;  %v1370_v16 = vld [vmem:[%s3087_s2 + $0x18] sm:$0xff] (%p2906_p12) }
 0x304   : >> { %2238 = vpow2.f32 %v1017_v18 }
 0x305   : >> { %v1019_v21 = vmul.f32 1.442695, %v1012_v20  ;;  %v1007_v49 = vmul.f32 1.442695, %v1000_v19 }
 0x307   : >> { %2240 = vpow2.f32 %v1019_v21 }
 0x308   : >> { %2242 = vpow2.f32 %v1001_v45  ;;  %v3133_v45 = vmov %v2862_v9 }
 0x309   : >> { %2244 = vpow2.f32 %v1003_v46  ;;  %v3134_v46 = vmov %v2856_v3  ;;  %v1369_v3 = vld [vmem:[%s3087_s2 + $0x10] sm:$0xff] (%p2906_p12) }
 0x30a   : >> { %2246 = vpow2.f32 %v1005_v48 }
 0x30b   : >> { %2248 = vpow2.f32 %v1007_v49  ;;  %v1486_v49 = vld [vmem:[#allocation3 + $0x18] sm:$0xff] (%p2906_p12) }
 0x30c   : >> { %v2235_v23 = vpop.eup %2234 }
 0x30d   : >> { %1970 = vmatmul.mubr.msk.f32.vlgmr.msra.gmra.mxu0 %vm676_vm3, %v2235_v23  ;;  %v1025_v24 = vsel %vm676_vm3, %v2235_v23, 0.0 }
 0x30e   : >> { %1026 = vadd.xlane.f32.xlu0 %v1025_v24  ;;  %1978 = vmatpush3.msra.mxu0 %v1865_v22  ;;  %v1879_v24 = vld [vmem:[%s3088_s3] ss:$0 sm:$0xff] (%p2906_p12) }
 0x30f   : >> { %1979 = vmatprep.mubr.msk.f32.mxu0 %vm2507_vm2, %v2506_v47 }
 0x310   : >> { %v2237_v26 = vpop.eup %2236 }
 0x311   : >> { %1975 = vmatmul.mubr.msk.f32.vlgmr.msra.gmra.mxu1 %vm676_vm3, %v2237_v26  ;;  %v1028_v27 = vsel %vm676_vm3, %v2237_v26, 0.0  ;;  %v2239_v28 = vpop.eup %2238 }
 0x312   : >> { %1983 = vmatpush3.msra.mxu1 %v1866_v25  ;;  %1029 = vadd.xlane.f32.xlu1 %v1028_v27  ;;  %v1031_v29 = vsel %vm676_vm3, %v2239_v28, 0.0 }
 0x313   : >> { %1980 = vmatmul.mubr.msk.f32.vlgmr.msra.gmra.mxu0 %vm676_vm3, %v2239_v28  ;;  %1984 = vmatprep.mubr.msk.f32.mxu1 %vm2507_vm2, %v2506_v47 }
 0x314   : >> { %v2241_v43 = vpop.eup %2240  ;;  %1032 = vadd.xlane.f32.xlu0 %v1031_v29 }
 0x315   : >> { %1985 = vmatmul.mubr.msk.f32.vlgmr.msra.gmra.mxu1 %vm676_vm3, %v2241_v43  ;;  %v1034_v44 = vsel %vm676_vm3, %v2241_v43, 0.0  ;;  %v2243_v50 = vpop.eup %2242  ;;  %v3131_v43 = vmov %v2874_v17  ;;  %v2508_v17 = vmov (%p2906_p12), 0.0  }
 0x316   : >> { %1035 = vadd.xlane.f32.xlu1 %v1034_v44  ;;  %v1021_v51 = vmul.f32 %v2470_v42, %v2243_v50  ;;  %v2245_v52 = vpop.eup %2244  ;;  %v1041_v1 = vmul.f32 %v2454_v38, %v2243_v50  ;;  %v3132_v44 = vmov %v2865_v10  ;;  %1987 = vmatprep.subr.mxu1 (%p2906_p12), %v2508_v17  ;;  %v1485_v50 = vld [vmem:[#allocation3 + $0x10] sm:$0xff] (%p2906_p12) }
 0x317   : >> { %v2247_v54 = vpop.eup %2246  ;;  %v1022_v55 = vmul.f32 %v2466_v41, %v2245_v52  ;;  %v1042_v5 = vmul.f32 %v2450_v37, %v2245_v52  ;;  %2009 = vmatprep.subr.mxu0 (%p2906_p12), %v2508_v17  ;;  %1988 = vmatpush3.msra.mxu1 (%p2906_p12), %v1370_v16 }
 0x318   : >> { %v2249_v56 = vpop.eup %2248  ;;  %v1023_v59 = vmul.f32 %v2462_v40, %v2247_v54  ;;  %v1043_v7 = vmul.f32 %v2446_v36, %v2247_v54  ;;  %1989 = vmatprep.subr.mxu1 (%p2906_p12), %v2508_v17  ;;  %1995 = vmatprep.mubr.msk.f32.mxu1 (%p2906_p12), %vm2509_vm4, %v2508_v17 }
 0x319   : >> { %v1024_v62 = vmul.f32 %v2458_v39, %v2249_v56  ;;  %v1044_v12 = vmul.f32 %v2442_v35, %v2249_v56  ;;  %1990 = vmatpush3.msra.mxu1 (%p2906_p12), %v1369_v3  ;;  %2025 = vmatprep.mubr.msk.f32.mxu0 (%p2906_p12), %vm2509_vm4, %v2508_v17 }
 0x31a   : > { %1991 = vmatprep.subr.mxu1 (%p2906_p12), %v2508_v17 }
 0x31b   : > { %1992 = vmatpush3.msra.mxu1 (%p2906_p12), %v1368_v31 }
 0x31c   : > { %1993 = vmatprep.subr.mxu1 (%p2906_p12), %v2508_v17 }
 0x31d   : > { %1994 = vmatpush3.msra.mxu1 (%p2906_p12), %v1367_v32 }
 0x31e   : > { %1998 = vmatprep.subr.mxu1 (%p2906_p12), %v2508_v17 }
 0x397   : >> { %v1027_v47 = vpop.xlane.xlu0 %1026 }
 0x398   : >> { %v2894_v42 = vadd.f32 %v1027_v47, %v1021_v51   ;;  %v1484_v51 = vld [vmem:[#allocation3 + $0x8] sm:$0xff] (%p2906_p12) }
 0x39a   : >> { %v3120_v53 = vmov %v2894_v42 }
 0x39b   : >> { %v1030_v57 = vpop.xlane.xlu1 %1029 }
 0x39c   : >> { %v1038_v58 = vadd.f32 %v1030_v57, %v1022_v55   ;;  %v1881_v55 = vld [vmem:[%s3093_s8] ss:$0 sm:$0xff] (%p2906_p12) }
 0x39d   : >> { %v1033_v60 = vpop.xlane.xlu0 %1032  ;;  %v1882_v57 = vld [vmem:[%s3094_s9] ss:$0 sm:$0xff] (%p2906_p12) }
 0x39e   : >> { %v1039_v61 = vadd.f32 %v1033_v60, %v1023_v59   ;;  %2250 = vrcp.f32 (%p2906_p12), %v1038_v58  ;;  %v1579_v60 = vld [vmem:[%s3091_s6 + $0x38] sm:$0xff] (%p2906_p12) }
 0x39f   : >> { %v1036_v63 = vpop.xlane.xlu1 %1035  ;;  %2010 = vmatpush3.msra.mxu0 (%p2906_p12), %v1579_v60 }
 0x3a0   : >> { %v1040_v0 = vadd.f32 %v1036_v63, %v1024_v62   ;;  %2252 = vrcp.f32 (%p2906_p12), %v1039_v61  ;;  %2011 = vmatprep.subr.mxu0 (%p2906_p12), %v2508_v17  ;;  %v1577_v62 = vld [vmem:[%s3091_s6 + $0x28] sm:$0xff] (%p2906_p12)  ;;  %v1576_v63 = vld [vmem:[%s3091_s6 + $0x20] sm:$0xff] (%p2906_p12) }
 0x3a2   : > { %2254 = vrcp.f32 (%p2906_p12), %v1040_v0 }
 0x3a3   : > { %2256 = vrcp.f32 (%p2906_p12), %v3120_v53 }
 0x3ab   : > { %v2251_v33 = vpop.eup (%p2906_p12), %2250 }
 0x3ad   : > { %v2253_v34 = vpop.eup (%p2906_p12), %2252 }
 0x3cd   : >> { %v1114_v2 = vpop.f32.mrf.mxu0 }
 0x3ce   : >> { %v2900_v38 = vadd.f32 %v1114_v2, %v1041_v1   ;;  %v1574_v1 = vld [vmem:[%s3091_s6 + $0x10] sm:$0xff] (%p2906_p12)  ;;  %v1573_v2 = vld [vmem:[%s3091_s6 + $0x8] sm:$0xff] (%p2906_p12) }
 0x3cf   : >> { %v1971_v42 = vpop.f32.mrf.mxu0 }
 0x3d0   : >> { %v3121_v4 = vmov %v2900_v38  ;;  %v3130_v42 = vmov %v3120_v53 }
 0x3d1   : >> { %v1187_v41 = vpop.f32.mrf.mxu1  ;;  %v3126_v38 = vmov %v3121_v4  ;;  %v1883_v42 = vld [vmem:[%s3090_s5] ss:$0 sm:$0xff] (%p2906_p12) }
 0x3d2   : >> { %v1338_v6 = vadd.f32 %v1187_v41, %v1042_v5   ;;  %v3129_v41 = vmov %v1038_v58 }
 0x3d3   : >> { %v1260_v8 = vpop.f32.mrf.mxu0  ;;  %v1976_v40 = vpop.f32.mrf.mxu1 }
 0x3d4   : >> { %v1339_v11 = vadd.f32 %v1260_v8, %v1043_v7   ;;  %v3125_v37 = vmov %v1338_v6  ;;  %v3128_v40 = vmov %v1039_v61  ;;  %649 = sbr.rel (!%p2906_p12) target bundleno = 423 (0x1a7), region = 134  ;;  %v1578_v61 = vld [vmem:[%s3091_s6 + $0x30] sm:$0xff] (%p2906_p12) }
 0x3d5   : >> { %v1981_v39 = vpop.f32.mrf.mxu0  ;;  %v1333_v13 = vpop.f32.mrf.mxu1  ;;  %2012 = vmatpush3.msra.mxu0 (%p2906_p12), %v1578_v61 }
 0x3d6   : >> { %v1340_v14 = vadd.f32 %v1333_v13, %v1044_v12   ;;  %v3124_v36 = vmov %v1339_v11  ;;  %v3127_v39 = vmov %v1040_v0  ;;  %v1347_v37 = vmul.f32 (%p2906_p12), %v2253_v34, %v1339_v11  ;;  %2013 = vmatprep.subr.mxu0 (%p2906_p12), %v2508_v17  ;;  %v1575_v0 = vld [vmem:[%s3091_s6 + $0x18] sm:$0xff] (%p2906_p12) }
 0x3d7   : >> { %v1986_v15 = vpop.f32.mrf.mxu1  ;;  %v2255_v36 = vpop.eup (%p2906_p12), %2254  ;;  %2014 = vmatpush3.msra.mxu0 (%p2906_p12), %v1577_v62  ;;  %v1885_v39 = vld [vmem:[%s3092_s7] ss:$0 sm:$0xff] (%p2906_p12) }
 0x3d8   : >> { %v3123_v35 = vmov %v1340_v14  ;;  %v1348_v38 = vmul.f32 (%p2906_p12), %v2255_v36, %v1340_v14  ;;  %v2257_v9 = vpop.eup (%p2906_p12), %2256  ;;  %2015 = vmatprep.subr.mxu0 (%p2906_p12), %v2508_v17 }
 0x3d9   : > { %v1346_v35 = vmul.f32 %v2251_v33, %v1338_v6  ;;  %v1345_v18 = vmul.f32 %v2257_v9, %v3121_v4  ;;  %2016 = vmatpush3.msra.mxu0 %v1576_v63  ;;  %v1572_v4 = vld [vmem:[%s3091_s6] sm:$0xff] }
 0x3da   : > { %1358 = vrot.lane.b32.xlu1 %v1348_v38, %s2511_s13  ;;  %2017 = vmatprep.subr.mxu0 %v2508_v17  ;;  %v1887_v9 = vld [vmem:[%s3095_s10] ss:$0 sm:$0xff] }
 0x3db   : > { %1350 = vrot.lane.b32.xlu0 %v1346_v35, %s2510_s15  ;;  %2018 = vmatpush3.msra.mxu0 %v1575_v0  ;;  %s1704_s15 = sadd.s32 %s2422_s24, %s1890_s18  ;;  %s3136_s24 = smov %s3135_s14 }
 0x3dc   : > { %2019 = vmatprep.subr.mxu0 %v2508_v17  ;;  %s1891_s20 = sshll.u32 %s1704_s15, 7  ;;  %s3137_s18 = sand.u32 1, %s2414_s22  }
 0x3dd   : > { %2020 = vmatpush3.msra.mxu0 %v1574_v1  ;;  %s1706_s25 = scalar_lea.hbm %s3097_s12, %s1891_s20  ;;  %s1693_s13 = scalar_lea.sflag [#allocation5], %s3137_s18 }
 0x3de   : > { %2021 = vmatprep.subr.mxu0 %v2508_v17  ;;  %s2513_s15 = smov [#allocation6]  }
 0x3df   : > { %1354 = vrot.lane.b32.xlu0 %v1347_v37, %s2512_s4  ;;  %2022 = vmatpush3.msra.mxu0 %v1573_v2  ;;  %s2290_s4 = scalar_lea.vmem %s1709_s26, 128  ;;  %s2294_s29 = sshll.u32 %s2513_s15, 4  ;;  %s2295_s29 = int_to_ptr.vmem [resolvable:$false] %s2294_s29 }
 0x3e0   : > { %2023 = vmatprep.subr.mxu0 %v2508_v17  ;;  %p2291_p0 = scmp.ne.s32.totalorder %s1709_s26, %s2290_s4  ;;  %s2296_s21 = scalar_lea.vmem %s2295_s29, 256 }
 0x3e1   : > { %2024 = vmatpush3.msra.mxu0 %v1572_v4  ;;  %p2297_p4 = scmp.lt.s32.totalorder %s1709_s26, %s2295_s29  ;;  %p2298_p5 = scmp.lt.s32.totalorder %s2296_s21, %s2290_s4 }
 0x3e2   : > { %p2292_p1 = pnand %p2291_p0, %p2631_p3 }
 0x3e3   : > { %p2299_p6 = por %p2298_p5, %p2297_p4 }
 0x3e4   : > { %p2293_p2 = pneg %p2292_p1 }
 0x3e6   : > { %p2300_p7 = pnand %p2299_p6, %p2293_p2 }
 0x44c   : > { %v1359_v19 = vpop.permute.xlu1 %1358 }
 0x44d   : > { %v1351_v10 = vpop.permute.xlu0 %1350 }
 0x44e   : > { %v1362_v20 = vsel %vm676_vm3, %v1345_v18, %v1351_v10  ;;  %v1888_v18 = vld [vmem:[%s3096_s11] ss:$0 sm:$0xff] }
 0x451   : > { %v1355_v21 = vpop.permute.xlu0 %1354 }
 0x452   : > { %v1364_v22 = vsel %vm1363_vm5, %v1362_v20, %v1355_v21 }
 0x453   : > { %v1366_v23 = vsel %vm1365_vm6, %v1364_v22, %v1359_v19 }
 0x454   : > { %1996 = vmatmul.mubr.msk.f32.vlgmr.msra.gmra.mxu1 %vm1378_vm7, %v1366_v23 }
 0x455   : > { %2006 = vmatprep.mubr.msk.f32.mxu1 %vm2509_vm4, %v2508_v17  ;;  %1999 = vmatpush3.msra.mxu1 %v1486_v49 }
 0x456   : > { %2000 = vmatprep.subr.mxu1 %v2508_v17 }
 0x457   : > { %2001 = vmatpush3.msra.mxu1 %v1485_v50 }
 0x458   : > { %2002 = vmatprep.subr.mxu1 %v2508_v17 }
 0x459   : > { %2003 = vmatpush3.msra.mxu1 %v1484_v51 }
 0x45a   : > { %2004 = vmatprep.subr.mxu1 %v2508_v17 }
 0x514   : > { %v1448_v25 = vpop.f32.mrf.mxu1 }
 0x515   : > { %v1449_v26 = vadd.f32 %v1879_v24, %v1448_v25 }
 0x516   : > { %v1997_v27 = vpop.f32.mrf.mxu1 }
 0x517   : > { %v1452_v28 = vadd.f32 %v1449_v26, %v2735_v30  ;;  %v1483_v30 = vld [vmem:[#allocation3] sm:$0xff] }
 0x518   : > { %2005 = vmatpush3.msra.mxu1 %v1483_v30 }
 0x519   : > { %v1453_v29 = vsel %vm1378_vm7, %v1452_v28, 0.0 }
 0x51a   : > { %1454 = vadd.xlane.f32.xlu1 %v1453_v29 }
 0x5a3   : > { %v1455_v43 = vpop.xlane.xlu1 %1454 }
 0x5a4   : > { %v1457_v44 = vmul.f32 0.03125, %v1455_v43 }
 0x5a6   : > { %v1458_v45 = vsub.f32 %v1452_v28, %v1457_v44 }
 0x5a8   : > { %v1459_v46 = vmul.f32 %v1458_v45, %v1458_v45 }
 0x5aa   : > { %v1460_v48 = vsel %vm1378_vm7, %v1459_v46, 0.0 }
 0x5ab   : > { %1461 = vadd.xlane.f32.xlu0 %v1460_v48 }
 0x634   : > { %v1462_v52 = vpop.xlane.xlu0 %1461 }
 0x635   : > { %v1463_v47 = vmul.f32 0.03125, %v1462_v52 }
 0x637   : > { %v1464_v53 = vadd.f32 1e-05, %v1463_v47 }
 0x639   : > { %2258 = vrsqrt.f32 %v1464_v53 }
 0x646   : > { %v2259_v54 = vpop.eup %2258 }
 0x647   : > { %v1466_v56 = vmul.f32 %v2259_v54, %v1458_v45 }
 0x649   : > { %v1474_v58 = vmul.f32 %v1881_v55, %v1466_v56 }
 0x64b   : > { %v1482_v59 = vadd.f32 %v1882_v57, %v1474_v58 }
 0x64d   : > { %2007 = vmatmul.mubr.msk.f32.vlgmr.msra.gmra.mxu1 %vm1378_vm7, %v1482_v59 }
 0x70d   : > { %v1563_v5 = vpop.f32.mrf.mxu1 }
 0x70e   : > { %v1564_v41 = vadd.f32 %v1883_v42, %v1563_v5 }
 0x70f   : > { %v2008_v6 = vpop.f32.mrf.mxu1 }
 0x710   : > { %v1568_v7 = vmul.f32 0.70710677, %v1564_v41  ;;  %v1567_v40 = vmul.f32 0.5, %v1564_v41 }
 0x712   : > { %2260 = verf.f32 %v1568_v7 }
 0x71f   : > { %v2261_v8 = vpop.eup %2260 }
 0x720   : > { %v1570_v11 = vadd.f32 1.0, %v2261_v8 }
 0x722   : > { %v1571_v12 = vmul.f32 %v1570_v11, %v1567_v40 }
 0x724   : > { %2026 = vmatmul.mubr.msk.f32.vlgmr.msra.gmra.mxu0 %vm1587_vm8, %v1571_v12 }
 0x7e4   : > { %v1657_v13 = vpop.f32.mrf.mxu0 }
 0x7e5   : > { %v1658_v14 = vadd.f32 %v1885_v39, %v1657_v13 }
 0x7e6   : > { %v2027_v15 = vpop.f32.mrf.mxu0 }
 0x7e7   : > { %v1661_v16 = vadd.f32 %v1658_v14, %v1482_v59 }
 0x7e9   : > { %v1662_v17 = vsel %vm1378_vm7, %v1661_v16, 0.0 }
 0x7ea   : > { %1663 = vadd.xlane.f32.xlu0 %v1662_v17 }
 0x873   : > { %v1664_v3 = vpop.xlane.xlu0 %1663 }
 0x874   : > { %v1665_v31 = vmul.f32 0.03125, %v1664_v3 }
 0x876   : > { %v1666_v32 = vsub.f32 %v1661_v16, %v1665_v31 }
 0x878   : > { %v1667_v33 = vmul.f32 %v1666_v32, %v1666_v32 }
 0x87a   : > { %v1668_v34 = vsel %vm1378_vm7, %v1667_v33, 0.0 }
 0x87b   : > { %1669 = vadd.xlane.f32.xlu1 %v1668_v34 }
 0x904   : > { %v1670_v35 = vpop.xlane.xlu1 %1669 }
 0x905   : > { %v1671_v36 = vmul.f32 0.03125, %v1670_v35 }
 0x907   : > { %v1672_v37 = vadd.f32 1e-05, %v1671_v36 }
 0x909   : > { %2262 = vrsqrt.f32 %v1672_v37 }
 0x916   : > { %v2263_v38 = vpop.eup %2262 }
 0x917   : > { %v1674_v10 = vmul.f32 %v2263_v38, %v1666_v32 }
 0x919   : > { %v1682_v19 = vmul.f32 %v1887_v9, %v1674_v10 }
 0x91b   : > { %v1690_v20 = vadd.f32 %v1888_v18, %v1682_v19 }
 0x91d   : > { %1691 = vst.msk [vmem:[%s3136_s24] sm:$0xff] %vm1378_vm7, %v1690_v20 }
 0x91e   : > { %2303 = shalt.err (!%p2300_p7)
}
 0x91f   : > { %s2304_s0 = scalar_lea.hbm %s1706_s25, 128  ;;  %s2308_s14 = scalar_lea.hbm %s3097_s12, 512 }
 0x920   : > { %p2305_p9 = scmp.ne.s32.totalorder %s1706_s25, %s2304_s0  ;;  %p2309_p10 = scmp.lt.s32.totalorder %s1706_s25, %s3097_s12 }
 0x921   : > { %p2310_p12 = scmp.lt.s32.totalorder %s2308_s14, %s2304_s0 }
 0x922   : > { %p2306_p11 = pnand %p2305_p9, %p2631_p3 }
 0x923   : > { %p2311_p0 = por %p2310_p12, %p2309_p10 }
 0x924   : > { %p2307_p13 = pneg %p2306_p11 }
 0x926   : > { %p2312_p1 = pnand %p2311_p0, %p2307_p13 }
 0x928   : > { %2315 = shalt.err (!%p2312_p1)
}
 0x929   : > { %2032 = dma.vmem_to_hbm [thread:$0]  (%p2631_p3), %s1709_s26, 128, %s1706_s25, %s1693_s13  }
 0x92a PF: > { %s3138_s18 = sld [smem:[#allocation9_spill]]  ;;  %p2044_p2 = scmp.ge.s32.totalorder %s2438_s28, 2 }
 0x92c   : > { %p2039_p4 = pnand %p2044_p2, %p2640_p8 }
 0x92e   : > { %p2040_p5 = pneg %p2039_p4 }
 0x930   : > { %s1720_s15 = sand.u32 1, %s3138_s18  }
 0x931   : > { %s1721_s29 = scalar_lea.sflag [#allocation5], %s1720_s15 }
 0x932   : > { %2405 = dma.done.wait (%p2040_p5), %s1721_s29, 128  }
 0x933   : > { %2407 = vsyncadd (%p2040_p5), %s1721_s29, 4294967168  ;;  %s26_s28 = sadd.s32 1, %s2438_s28   ;;  %s3140_s24 = sld [smem:[#allocation10_spill]] }
 0x934   : > { %p23_p6 = scmp.ge.s32.totalorder %s26_s28, 6   ;;  %s3141_s26 = sld [smem:[#allocation11_spill]] }
 0x935   : > { %s3142_s17 = sld [smem:[#allocation12_spill]]  ;;  %s3143_s21 = smov %s2414_s22 }
 0x936   : > { %s3144_s22 = smov %s2418_s23  ;;  %s3145_s23 = smov %s2658_s30 }
 0x937   : > { %s3146_s25 = smov %s2434_s27  ;;  %25 = sbr.rel (!%p23_p6) target bundleno = 9 (0x9), region = 145 }
 0x93b   : > { %s3147_s27 = smov %s3142_s17 }
 0x93c   :  { %1726 = vsyncpa [#allocation4], 1 }
 0x93d   :  { %1728 = vsyncpa [#allocation4 + $0x1], 1 }
 0x93e   :  { %1729 = vsyncpa [#allocation5], 1 }
 0x93f   :  { %1731 = vsyncpa [#allocation5 + $0x1], 1 }

</bundles_post_ra>
